<compile_context>
chip_gen: v5e
topology: v5e:2x2
jax: 0.10.0
libtpu: 0.0.40
codegen_flags: <defaults>
</compile_context>

<pallas_src>
import numpy as np
import jax
import jax.numpy as jnp
from jax.experimental import pallas as pl
from jax.experimental.pallas import tpu as pltpu


# ----------------------------------------------------------------------------
# Pallas kernel: fused 6-layer matmul chain (the whole autoencoder) on a row-tile.
#   refs = (w0, b0, w1, b1, ..., w5, b5, out)
# ----------------------------------------------------------------------------
_ACTIVATIONS = ("relu", "relu", "relu", "none", "relu", "sigmoid")


def _rewirl_fused_kernel(x_ref, *refs):
    o_ref = refs[-1]
    h = x_ref[...]                                   # (tm, in_feat) f32
    for li, act in enumerate(_ACTIVATIONS):
        w = refs[2 * li][...]                        # (K, N)  bf16
        b = refs[2 * li + 1][...]                    # (1, N)  f32
        # Cast to the MXU input dtype in-kernel (bf16), accumulate in f32;
        # bias / relu / sigmoid epilogue stays f32 (v5e-safe).
        h = jnp.dot(h.astype(w.dtype), w, preferred_element_type=jnp.float32) + b
        if act == "relu":
            h = jnp.maximum(h, 0.0)
        elif act == "sigmoid":
            h = jax.nn.sigmoid(h)
        # "none": identity
    o_ref[...] = h.astype(o_ref.dtype)


# ----------------------------------------------------------------------------
# Parameter preparation (host-side, once): fold convs into dense matrices,
# fold the torch (C,H,W) flatten order into enc_l1, reshape biases to (1, N).
# ----------------------------------------------------------------------------
def _conv_as_dense(w_oihw, h_in, w_in, stride, pad):
    """Exact dense matrix A s.t. conv(x) == x_flat @ A.

    x_flat columns ordered (h, w, c_in); A columns ordered (oh, ow, c_out).
    Zero padding of the input is represented by simply omitting those taps.
    """
    w = np.asarray(w_oihw, np.float32)
    cout, cin, kh, kw = w.shape
    h_out = (h_in + 2 * pad - kh) // stride + 1
    w_out = (w_in + 2 * pad - kw) // stride + 1
    a = np.zeros((h_in * w_in * cin, h_out * w_out * cout), np.float32)
    for oh in range(h_out):
        for ow in range(w_out):
            col0 = (oh * w_out + ow) * cout
            for di in range(kh):
                ih = stride * oh + di - pad
                if not (0 <= ih < h_in):
                    continue
                for dj in range(kw):
                    iw = stride * ow + dj - pad
                    if not (0 <= iw < w_in):
                        continue
                    row0 = (ih * w_in + iw) * cin
                    a[row0:row0 + cin, col0:col0 + cout] = w[:, :, di, dj].T
    return a, h_out, w_out


def prepare_params(params, meta, compute_dtype=jnp.bfloat16):
    im = meta["im_dim"]
    c2, h1, h2 = meta["c2"], meta["h1"], meta["h2"]

    a1, oh1, ow1 = _conv_as_dense(params["conv1_w"], im, im, stride=2, pad=1)
    assert (oh1, ow1) == (h1, h1)
    a2, oh2, ow2 = _conv_as_dense(params["conv2_w"], h1, h1, stride=2, pad=1)
    assert (oh2, ow2) == (h2, h2)

    # conv biases tiled over spatial positions: column order (h, w, c_out).
    b1t = np.tile(np.asarray(params["conv1_b"], np.float32), h1 * h1)[None, :]
    b2t = np.tile(np.asarray(params["conv2_b"], np.float32), h2 * h2)[None, :]

    # enc_l1 rows: torch flattens the conv output in (C, H, W) order; our
    # in-kernel feature columns are in (H, W, C) order -> permute weight rows.
    idx = np.empty((c2 * h2 * h2,), np.int32)
    for hh in range(h2):
        for ww in range(h2):
            for cc in range(c2):
                idx[(hh * h2 + ww) * c2 + cc] = cc * h2 * h2 + hh * h2 + ww
    w3 = np.asarray(params["enc_l1_w"], np.float32)[idx, :]

    weights = [
        a1,                                                # conv1 as matmul
        a2,                                                # conv2 as matmul
        w3,                                                # enc_l1 (permuted rows)
        np.asarray(params["enc_l2_w"], np.float32),
        np.asarray(params["dec_l1_w"], np.float32),
        np.asarray(params["dec_l2_w"], np.float32),
    ]
    biases = [b1t, b2t,
              np.asarray(params["enc_l1_b"], np.float32)[None, :],
              np.asarray(params["enc_l2_b"], np.float32)[None, :],
              np.asarray(params["dec_l1_b"], np.float32)[None, :],
              np.asarray(params["dec_l2_b"], np.float32)[None, :]]

    return {
        "weights": tuple(jnp.asarray(w, compute_dtype) for w in weights),
        "biases": tuple(jnp.asarray(b, jnp.float32) for b in biases),
    }


# ----------------------------------------------------------------------------
# Synthetic torch-layout parameters (deterministic).
# ----------------------------------------------------------------------------
def init_params(key, im_dim, enc_output_dim,
                c1_out=8, c2_out=16, enc_hidden=64, dec_hidden=64):
    ks = jax.random.split(key, 12)

    def dense(k, fan_in, shape):
        return jax.random.normal(k, shape, jnp.float32) * np.sqrt(2.0 / fan_in)

    def bias(k, fan_in, n):
        bound = 1.0 / np.sqrt(fan_in)
        return jax.random.uniform(k, (n,), jnp.float32, -bound, bound)

    h1 = im_dim // 2          # conv1 stride 2
    h2 = h1 // 2              # conv2 stride 2
    flat = c2_out * h2 * h2

    params = {
        "conv1_w": dense(ks[0], 1 * 9, (c1_out, 1, 3, 3)),
        "conv1_b": bias(ks[1], 1 * 9, c1_out),
        "conv2_w": dense(ks[2], c1_out * 9, (c2_out, c1_out, 3, 3)),
        "conv2_b": bias(ks[3], c1_out * 9, c2_out),
        # linear weights stored as (in, out) = torch weight.T; enc_l1 rows in
        # torch (C, H, W) flatten order.
        "enc_l1_w": dense(ks[4], flat, (flat, enc_hidden)),
        "enc_l1_b": bias(ks[5], flat, enc_hidden),
        "enc_l2_w": dense(ks[6], enc_hidden, (enc_hidden, enc_output_dim)),
        "enc_l2_b": bias(ks[7], enc_hidden, enc_output_dim),
        "dec_l1_w": dense(ks[8], enc_output_dim, (enc_output_dim, dec_hidden)),
        "dec_l1_b": bias(ks[9], enc_output_dim, dec_hidden),
        "dec_l2_w": dense(ks[10], dec_hidden, (dec_hidden, im_dim * im_dim)),
        "dec_l2_b": bias(ks[11], dec_hidden, im_dim * im_dim),
    }
    meta = dict(im_dim=im_dim, c1=c1_out, c2=c2_out, h1=h1, h2=h2, flat=flat)
    return params, meta


# ----------------------------------------------------------------------------
# Row-tile / grid selection and dimension semantics.
# ----------------------------------------------------------------------------
def _choose_row_tile(n, max_tile=1024):
    """Pick (tm, n_pad) with n_pad % tm == 0 and minimal tail waste.

    n <= max_tile          -> one full-extent block, no padding at all
                              (a full-dim sublane block is always legal).
    n has a /8 divisor tm  -> exact fit, no padding, no jnp.pad input copy.
    otherwise              -> pad to the smallest 8-aligned n_pad reachable,
                              preferring the largest tile among ties.
    """
    if n <= max_tile:
        return n, n
    tiles = range(max_tile - max_tile % 8, 7, -8)      # 1024, 1016, ..., 8
    for tm in tiles:
        if n % tm == 0:
            return tm, n
    n8 = -(-n // 8) * 8
    best = min(tiles, key=lambda tm: (-(-n8 // tm) * tm, -tm))
    return best, -(-n8 // best) * best


def _row_dimension_semantics(grid_m):
    """CORE_PARALLEL on v7x (2 TCs) when there are >= 2 row tiles; else parallel."""
    kind = ""
    try:
        kind = jax.devices()[0].device_kind.lower()
    except Exception:  # pragma: no cover - defensive, trace-time only
        pass
    if grid_m >= 2 and ("v7" in kind or "7x" in kind):
        return (pltpu.CORE_PARALLEL,)
    return ("parallel",)


# ----------------------------------------------------------------------------
# Forward pass: one pallas_call for the whole autoencoder.
# ----------------------------------------------------------------------------
def rewirl_autoencoder_forward(prepared, x):
    """x: (N, 1, im_dim, im_dim) f32 -> reconstruction (N, 1, im_dim, im_dim) f32."""
    n = x.shape[0]
    im = x.shape[-1]
    in_feat = x.shape[1] * x.shape[2] * x.shape[3]

    weights = prepared["weights"]
    biases = prepared["biases"]
    out_feat = weights[-1].shape[1]

    # Raw f32 input slab; the bf16 cast happens inside the kernel (no extra
    # XLA cast op, no bf16 input copy bounced through HBM).
    # (C=1, so NCHW flatten == the (H, W, C) order the conv matrices expect.)
    xf = x.reshape(n, in_feat)

    tm, n_pad = _choose_row_tile(n, max_tile=1024)
    if n_pad != n:
        xf = jnp.pad(xf, ((0, n_pad - n), (0, 0)))
    grid_m = n_pad // tm

    in_specs = [pl.BlockSpec((tm, in_feat), lambda i: (i, 0))]
    operands = [xf]
    for w_, b_ in zip(weights, biases):
        # Constant index_map -> weights/biases stay VMEM-resident across steps.
        in_specs.append(pl.BlockSpec(tuple(w_.shape), lambda i: (0, 0)))
        in_specs.append(pl.BlockSpec(tuple(b_.shape), lambda i: (0, 0)))
        operands += [w_, b_]
    out_specs = pl.BlockSpec((tm, out_feat), lambda i: (i, 0))

    # --- VMEM budget ---------------------------------------------------------
    weight_bytes = sum(int(w_.size) * w_.dtype.itemsize for w_ in weights)
    bias_bytes = sum(int(b_.size) * b_.dtype.itemsize for b_ in biases)
    # TODO(synk): for im_dim >= ~32 the folded conv matrices outgrow VMEM on
    # v7x (64 MiB physical); they would need a K-axis reduction grid or an
    # emit_pipeline stream from HBM instead of being fully resident.
    if 2 * (weight_bytes + bias_bytes) > (24 << 20):
        raise NotImplementedError(
            "Folded conv matrices too large to stay VMEM-resident; stream them "
            "with a K-reduction grid (not needed at im_dim<=16).")

    io_bytes = 2 * tm * in_feat * 4 + 2 * tm * out_feat * 4     # double-buffered tiles
    interm_bytes = 4 * tm * sum(int(w_.shape[1]) for w_ in weights)  # f32 chain
    vmem_limit = int(min(max(2 * (weight_bytes + bias_bytes) + io_bytes
                             + interm_bytes + (4 << 20), 32 << 20), 64 << 20))

    flops = 2 * n_pad * sum(int(w_.shape[0]) * int(w_.shape[1]) for w_ in weights)
    bytes_accessed = (
        xf.size * xf.dtype.itemsize
        + weight_bytes + bias_bytes
        + n_pad * out_feat * 4
    )
    cost = pl.CostEstimate(flops=flops,
                           transcendentals=n_pad * out_feat,   # sigmoid
                           bytes_accessed=bytes_accessed)

    out = pl.pallas_call(
        _rewirl_fused_kernel,
        out_shape=jax.ShapeDtypeStruct((n_pad, out_feat), jnp.float32),
        grid=(grid_m,),
        in_specs=in_specs,
        out_specs=out_specs,
        compiler_params=pltpu.CompilerParams(
            dimension_semantics=_row_dimension_semantics(grid_m),
            vmem_limit_bytes=vmem_limit),
        cost_estimate=cost,
    )(*operands)

    # Drop padded rows *before* reshaping (padded sigmoid outputs never leak).
    return out[:n].reshape(n, 1, im, im)


# ----------------------------------------------------------------------------
# Pure-JAX f32 reference (torch-faithful forward) for tolerance checking.
# ----------------------------------------------------------------------------
def _reference_forward(params, meta, x):
    def conv(h, w, b):
        y = jax.lax.conv_general_dilated(
            h, w, window_strides=(2, 2), padding=((1, 1), (1, 1)),
            dimension_numbers=("NCHW", "OIHW", "NCHW"))
        return jax.nn.relu(y + b[None, :, None, None])

    h = conv(x, params["conv1_w"], params["conv1_b"])
    h = conv(h, params["conv2_w"], params["conv2_b"])
    h = h.reshape(x.shape[0], -1)                               # torch (C,H,W) flatten
    h = jax.nn.relu(h @ params["enc_l1_w"] + params["enc_l1_b"])
    z = h @ params["enc_l2_w"] + params["enc_l2_b"]             # encoder features
    d = jax.nn.relu(z @ params["dec_l1_w"] + params["dec_l1_b"])
    out = jax.nn.sigmoid(d @ params["dec_l2_w"] + params["dec_l2_b"])
    return out.reshape(x.shape[0], 1, meta["im_dim"], meta["im_dim"])


if __name__ == "__main__":
    IM_DIM = 16
    ENC_OUTPUT_DIM = 32
    BATCH = 2

    key = jax.random.PRNGKey(0)
    pkey, xkey = jax.random.split(key)

    params, meta = init_params(pkey, IM_DIM, ENC_OUTPUT_DIM)
    prepared = prepare_params(params, meta)            # one-time host-side fold
    x = jax.random.uniform(xkey, (BATCH, 1, IM_DIM, IM_DIM), jnp.float32)

    fwd = jax.jit(rewirl_autoencoder_forward)
    out = jax.block_until_ready(fwd(prepared, x))

    assert out.shape == (BATCH, 1, IM_DIM, IM_DIM), out.shape
    assert out.dtype == jnp.float32
    assert bool(jnp.all(jnp.isfinite(out)))
    assert bool(jnp.all((out >= 0.0) & (out <= 1.0)))  # sigmoid output range

    # bf16 MXU inputs vs f32 reference -> loose but bug-catching tolerance.
    ref = jax.block_until_ready(_reference_forward(params, meta, x))
    np.testing.assert_allclose(np.asarray(out), np.asarray(ref), atol=3e-2, rtol=0)

    print("KERNEL_OK")
</pallas_src>

<mosaic_0001>
module attributes {stable_mosaic.version = 11 : i64} {
  func.func @_rewirl_fused_kernel(%arg0: i32, %arg1: memref<2x256xf32, #tpu.memory_space<vmem>>, %arg2: memref<256x512xbf16, #tpu.memory_space<vmem>>, %arg3: memref<1x512xf32, #tpu.memory_space<vmem>>, %arg4: memref<512x256xbf16, #tpu.memory_space<vmem>>, %arg5: memref<1x256xf32, #tpu.memory_space<vmem>>, %arg6: memref<256x64xbf16, #tpu.memory_space<vmem>>, %arg7: memref<1x64xf32, #tpu.memory_space<vmem>>, %arg8: memref<64x32xbf16, #tpu.memory_space<vmem>>, %arg9: memref<1x32xf32, #tpu.memory_space<vmem>>, %arg10: memref<32x64xbf16, #tpu.memory_space<vmem>>, %arg11: memref<1x64xf32, #tpu.memory_space<vmem>>, %arg12: memref<64x256xbf16, #tpu.memory_space<vmem>>, %arg13: memref<1x256xf32, #tpu.memory_space<vmem>>, %arg14: memref<2x256xf32, #tpu.memory_space<vmem>>) attributes {dimension_semantics = [#tpu.dimension_semantics<parallel>], iteration_bounds = array<i64: 1>, scalar_prefetch = 0 : i64, scratch_operands = 0 : i64, tpu.core_type = #tpu.core_type<tc>, window_params = [{transform_indices = @transform_0, window_bounds = array<i64: 2, 256>}, {pipeline_mode = #tpu.pipeline_mode<synchronous>, transform_indices = @transform_1, window_bounds = array<i64: 256, 512>}, {pipeline_mode = #tpu.pipeline_mode<synchronous>, transform_indices = @transform_2, window_bounds = array<i64: 1, 512>}, {pipeline_mode = #tpu.pipeline_mode<synchronous>, transform_indices = @transform_3, window_bounds = array<i64: 512, 256>}, {pipeline_mode = #tpu.pipeline_mode<synchronous>, transform_indices = @transform_4, window_bounds = array<i64: 1, 256>}, {pipeline_mode = #tpu.pipeline_mode<synchronous>, transform_indices = @transform_5, window_bounds = array<i64: 256, 64>}, {pipeline_mode = #tpu.pipeline_mode<synchronous>, transform_indices = @transform_6, window_bounds = array<i64: 1, 64>}, {pipeline_mode = #tpu.pipeline_mode<synchronous>, transform_indices = @transform_7, window_bounds = array<i64: 64, 32>}, {pipeline_mode = #tpu.pipeline_mode<synchronous>, transform_indices = @transform_8, window_bounds = array<i64: 1, 32>}, {pipeline_mode = #tpu.pipeline_mode<synchronous>, transform_indices = @transform_9, window_bounds = array<i64: 32, 64>}, {pipeline_mode = #tpu.pipeline_mode<synchronous>, transform_indices = @transform_10, window_bounds = array<i64: 1, 64>}, {pipeline_mode = #tpu.pipeline_mode<synchronous>, transform_indices = @transform_11, window_bounds = array<i64: 64, 256>}, {pipeline_mode = #tpu.pipeline_mode<synchronous>, transform_indices = @transform_12, window_bounds = array<i64: 1, 256>}, {transform_indices = @transform_13, window_bounds = array<i64: 2, 256>}]} {
    %c0 = arith.constant 0 : index
    %c0_0 = arith.constant 0 : index
    %0 = vector.load %arg1[%c0, %c0_0] : memref<2x256xf32, #tpu.memory_space<vmem>>, vector<2x256xf32>
    %c0_1 = arith.constant 0 : index
    %c0_2 = arith.constant 0 : index
    %1 = vector.load %arg2[%c0_1, %c0_2] : memref<256x512xbf16, #tpu.memory_space<vmem>>, vector<256x512xbf16>
    %c0_3 = arith.constant 0 : index
    %c0_4 = arith.constant 0 : index
    %2 = vector.load %arg3[%c0_3, %c0_4] : memref<1x512xf32, #tpu.memory_space<vmem>>, vector<1x512xf32>
    %3 = arith.truncf %0 : vector<2x256xf32> to vector<2x256xbf16>
    %cst = arith.constant dense<0.000000e+00> : vector<2x512xf32>
    %4 = tpu.matmul %3, %1, %cst {dimension_numbers = #tpu.dot_dimension_numbers<[1], [0], [0], [1], [0, 0, 1, 1], [], []>} : vector<2x256xbf16>, vector<256x512xbf16>, vector<2x512xf32> -> vector<2x512xf32>
    %5 = vector.broadcast %2 : vector<1x512xf32> to vector<2x512xf32>
    %6 = arith.addf %4, %5 : vector<2x512xf32>
    %cst_5 = arith.constant 0.000000e+00 : f32
    %7 = vector.broadcast %cst_5 : f32 to vector<2x512xf32>
    %8 = arith.maximumf %6, %7 : vector<2x512xf32>
    %c0_6 = arith.constant 0 : index
    %c0_7 = arith.constant 0 : index
    %9 = vector.load %arg4[%c0_6, %c0_7] : memref<512x256xbf16, #tpu.memory_space<vmem>>, vector<512x256xbf16>
    %c0_8 = arith.constant 0 : index
    %c0_9 = arith.constant 0 : index
    %10 = vector.load %arg5[%c0_8, %c0_9] : memref<1x256xf32, #tpu.memory_space<vmem>>, vector<1x256xf32>
    %11 = arith.truncf %8 : vector<2x512xf32> to vector<2x512xbf16>
    %cst_10 = arith.constant dense<0.000000e+00> : vector<2x256xf32>
    %12 = tpu.matmul %11, %9, %cst_10 {dimension_numbers = #tpu.dot_dimension_numbers<[1], [0], [0], [1], [0, 0, 1, 1], [], []>} : vector<2x512xbf16>, vector<512x256xbf16>, vector<2x256xf32> -> vector<2x256xf32>
    %13 = vector.broadcast %10 : vector<1x256xf32> to vector<2x256xf32>
    %14 = arith.addf %12, %13 : vector<2x256xf32>
    %cst_11 = arith.constant 0.000000e+00 : f32
    %15 = vector.broadcast %cst_11 : f32 to vector<2x256xf32>
    %16 = arith.maximumf %14, %15 : vector<2x256xf32>
    %c0_12 = arith.constant 0 : index
    %c0_13 = arith.constant 0 : index
    %17 = vector.load %arg6[%c0_12, %c0_13] : memref<256x64xbf16, #tpu.memory_space<vmem>>, vector<256x64xbf16>
    %c0_14 = arith.constant 0 : index
    %c0_15 = arith.constant 0 : index
    %18 = vector.load %arg7[%c0_14, %c0_15] : memref<1x64xf32, #tpu.memory_space<vmem>>, vector<1x64xf32>
    %19 = arith.truncf %16 : vector<2x256xf32> to vector<2x256xbf16>
    %cst_16 = arith.constant dense<0.000000e+00> : vector<2x64xf32>
    %20 = tpu.matmul %19, %17, %cst_16 {dimension_numbers = #tpu.dot_dimension_numbers<[1], [0], [0], [1], [0, 0, 1, 1], [], []>} : vector<2x256xbf16>, vector<256x64xbf16>, vector<2x64xf32> -> vector<2x64xf32>
    %21 = vector.broadcast %18 : vector<1x64xf32> to vector<2x64xf32>
    %22 = arith.addf %20, %21 : vector<2x64xf32>
    %cst_17 = arith.constant 0.000000e+00 : f32
    %23 = vector.broadcast %cst_17 : f32 to vector<2x64xf32>
    %24 = arith.maximumf %22, %23 : vector<2x64xf32>
    %c0_18 = arith.constant 0 : index
    %c0_19 = arith.constant 0 : index
    %25 = vector.load %arg8[%c0_18, %c0_19] : memref<64x32xbf16, #tpu.memory_space<vmem>>, vector<64x32xbf16>
    %c0_20 = arith.constant 0 : index
    %c0_21 = arith.constant 0 : index
    %26 = vector.load %arg9[%c0_20, %c0_21] : memref<1x32xf32, #tpu.memory_space<vmem>>, vector<1x32xf32>
    %27 = arith.truncf %24 : vector<2x64xf32> to vector<2x64xbf16>
    %cst_22 = arith.constant dense<0.000000e+00> : vector<2x32xf32>
    %28 = tpu.matmul %27, %25, %cst_22 {dimension_numbers = #tpu.dot_dimension_numbers<[1], [0], [0], [1], [0, 0, 1, 1], [], []>} : vector<2x64xbf16>, vector<64x32xbf16>, vector<2x32xf32> -> vector<2x32xf32>
    %29 = vector.broadcast %26 : vector<1x32xf32> to vector<2x32xf32>
    %30 = arith.addf %28, %29 : vector<2x32xf32>
    %c0_23 = arith.constant 0 : index
    %c0_24 = arith.constant 0 : index
    %31 = vector.load %arg10[%c0_23, %c0_24] : memref<32x64xbf16, #tpu.memory_space<vmem>>, vector<32x64xbf16>
    %c0_25 = arith.constant 0 : index
    %c0_26 = arith.constant 0 : index
    %32 = vector.load %arg11[%c0_25, %c0_26] : memref<1x64xf32, #tpu.memory_space<vmem>>, vector<1x64xf32>
    %33 = arith.truncf %30 : vector<2x32xf32> to vector<2x32xbf16>
    %cst_27 = arith.constant dense<0.000000e+00> : vector<2x64xf32>
    %34 = tpu.matmul %33, %31, %cst_27 {dimension_numbers = #tpu.dot_dimension_numbers<[1], [0], [0], [1], [0, 0, 1, 1], [], []>} : vector<2x32xbf16>, vector<32x64xbf16>, vector<2x64xf32> -> vector<2x64xf32>
    %35 = vector.broadcast %32 : vector<1x64xf32> to vector<2x64xf32>
    %36 = arith.addf %34, %35 : vector<2x64xf32>
    %cst_28 = arith.constant 0.000000e+00 : f32
    %37 = vector.broadcast %cst_28 : f32 to vector<2x64xf32>
    %38 = arith.maximumf %36, %37 : vector<2x64xf32>
    %c0_29 = arith.constant 0 : index
    %c0_30 = arith.constant 0 : index
    %39 = vector.load %arg12[%c0_29, %c0_30] : memref<64x256xbf16, #tpu.memory_space<vmem>>, vector<64x256xbf16>
    %c0_31 = arith.constant 0 : index
    %c0_32 = arith.constant 0 : index
    %40 = vector.load %arg13[%c0_31, %c0_32] : memref<1x256xf32, #tpu.memory_space<vmem>>, vector<1x256xf32>
    %41 = arith.truncf %38 : vector<2x64xf32> to vector<2x64xbf16>
    %cst_33 = arith.constant dense<0.000000e+00> : vector<2x256xf32>
    %42 = tpu.matmul %41, %39, %cst_33 {dimension_numbers = #tpu.dot_dimension_numbers<[1], [0], [0], [1], [0, 0, 1, 1], [], []>} : vector<2x64xbf16>, vector<64x256xbf16>, vector<2x256xf32> -> vector<2x256xf32>
    %43 = vector.broadcast %40 : vector<1x256xf32> to vector<2x256xf32>
    %44 = arith.addf %42, %43 : vector<2x256xf32>
    %45 = arith.negf %44 : vector<2x256xf32>
    %46 = math.exp %45 : vector<2x256xf32>
    %cst_34 = arith.constant 1.000000e+00 : f32
    %47 = vector.broadcast %cst_34 : f32 to vector<2x256xf32>
    %48 = arith.addf %47, %46 : vector<2x256xf32>
    %49 = arith.divf %47, %48 : vector<2x256xf32>
    %c0_35 = arith.constant 0 : index
    %c0_36 = arith.constant 0 : index
    %50 = vector.load %arg14[%c0_35, %c0_36] : memref<2x256xf32, #tpu.memory_space<vmem>>, vector<2x256xf32>
    tpu.vector_store %arg14[%c0_35, %c0_36], %49 {strides = array<i32>} : memref<2x256xf32, #tpu.memory_space<vmem>>, vector<2x256xf32>,
    return
  }
  func.func @transform_0(%arg0: i32) -> (i32, i32) {
    %c0_i32 = arith.constant 0 : i32
    %c0_i32_0 = arith.constant 0 : i32
    return %arg0, %c0_i32 : i32, i32
  }
  func.func @transform_1(%arg0: i32) -> (i32, i32) {
    %c0_i32 = arith.constant 0 : i32
    %c0_i32_0 = arith.constant 0 : i32
    %c0_i32_1 = arith.constant 0 : i32
    return %c0_i32, %c0_i32_0 : i32, i32
  }
  func.func @transform_2(%arg0: i32) -> (i32, i32) {
    %c0_i32 = arith.constant 0 : i32
    %c0_i32_0 = arith.constant 0 : i32
    %c0_i32_1 = arith.constant 0 : i32
    return %c0_i32, %c0_i32_0 : i32, i32
  }
  func.func @transform_3(%arg0: i32) -> (i32, i32) {
    %c0_i32 = arith.constant 0 : i32
    %c0_i32_0 = arith.constant 0 : i32
    %c0_i32_1 = arith.constant 0 : i32
    return %c0_i32, %c0_i32_0 : i32, i32
  }
  func.func @transform_4(%arg0: i32) -> (i32, i32) {
    %c0_i32 = arith.constant 0 : i32
    %c0_i32_0 = arith.constant 0 : i32
    %c0_i32_1 = arith.constant 0 : i32
    return %c0_i32, %c0_i32_0 : i32, i32
  }
  func.func @transform_5(%arg0: i32) -> (i32, i32) {
    %c0_i32 = arith.constant 0 : i32
    %c0_i32_0 = arith.constant 0 : i32
    %c0_i32_1 = arith.constant 0 : i32
    return %c0_i32, %c0_i32_0 : i32, i32
  }
  func.func @transform_6(%arg0: i32) -> (i32, i32) {
    %c0_i32 = arith.constant 0 : i32
    %c0_i32_0 = arith.constant 0 : i32
    %c0_i32_1 = arith.constant 0 : i32
    return %c0_i32, %c0_i32_0 : i32, i32
  }
  func.func @transform_7(%arg0: i32) -> (i32, i32) {
    %c0_i32 = arith.constant 0 : i32
    %c0_i32_0 = arith.constant 0 : i32
    %c0_i32_1 = arith.constant 0 : i32
    return %c0_i32, %c0_i32_0 : i32, i32
  }
  func.func @transform_8(%arg0: i32) -> (i32, i32) {
    %c0_i32 = arith.constant 0 : i32
    %c0_i32_0 = arith.constant 0 : i32
    %c0_i32_1 = arith.constant 0 : i32
    return %c0_i32, %c0_i32_0 : i32, i32
  }
  func.func @transform_9(%arg0: i32) -> (i32, i32) {
    %c0_i32 = arith.constant 0 : i32
    %c0_i32_0 = arith.constant 0 : i32
    %c0_i32_1 = arith.constant 0 : i32
    return %c0_i32, %c0_i32_0 : i32, i32
  }
  func.func @transform_10(%arg0: i32) -> (i32, i32) {
    %c0_i32 = arith.constant 0 : i32
    %c0_i32_0 = arith.constant 0 : i32
    %c0_i32_1 = arith.constant 0 : i32
    return %c0_i32, %c0_i32_0 : i32, i32
  }
  func.func @transform_11(%arg0: i32) -> (i32, i32) {
    %c0_i32 = arith.constant 0 : i32
    %c0_i32_0 = arith.constant 0 : i32
    %c0_i32_1 = arith.constant 0 : i32
    return %c0_i32, %c0_i32_0 : i32, i32
  }
  func.func @transform_12(%arg0: i32) -> (i32, i32) {
    %c0_i32 = arith.constant 0 : i32
    %c0_i32_0 = arith.constant 0 : i32
    %c0_i32_1 = arith.constant 0 : i32
    return %c0_i32, %c0_i32_0 : i32, i32
  }
  func.func @transform_13(%arg0: i32) -> (i32, i32) {
    %c0_i32 = arith.constant 0 : i32
    %c0_i32_0 = arith.constant 0 : i32
    return %arg0, %c0_i32 : i32, i32
  }
}

</mosaic_0001>

<bundles_post_ra>
// kernel: rewirl_autoencoder_forward.1
= control target key start
LH: loop header
LB: loop body
LE: loop exit
PB: predicated region body
PF: predicated region fallthrough
CT: control target
= control target key end

     0   :  { %18 = vsyncpa [#allocation3], 0  ;;  %s2583_s0 = inlined_call_operand.vmem [shape: f32[2,256], index: 0, kind: input, shape index: {}]   ;;  %s2584_s1 = inlined_call_operand.hbm [shape: bf16[256,512], index: 1, kind: input, shape index: {}]   ;;  %s2585_s2 = inlined_call_operand.vmem [shape: f32[1,512], index: 2, kind: input, shape index: {}]   ;;  %s2586_s3 = inlined_call_operand.hbm [shape: bf16[512,256], index: 3, kind: input, shape index: {}]   ;;  %s2587_s4 = inlined_call_operand.vmem [shape: f32[1,256], index: 4, kind: input, shape index: {}]   ;;  %s2588_s5 = inlined_call_operand.vmem [shape: bf16[256,64], index: 5, kind: input, shape index: {}]   ;;  %s2589_s6 = inlined_call_operand.vmem [shape: f32[1,64], index: 6, kind: input, shape index: {}]   ;;  %s2590_s7 = inlined_call_operand.vmem [shape: bf16[64,32], index: 7, kind: input, shape index: {}]   ;;  %s2591_s8 = inlined_call_operand.vmem [shape: f32[1,32], index: 8, kind: input, shape index: {}]   ;;  %s2592_s9 = inlined_call_operand.vmem [shape: bf16[32,64], index: 9, kind: input, shape index: {}]   ;;  %s2593_s10 = inlined_call_operand.vmem [shape: f32[1,64], index: 10, kind: input, shape index: {}]   ;;  %s2594_s11 = inlined_call_operand.vmem [shape: bf16[64,256], index: 11, kind: input, shape index: {}]   ;;  %s2595_s12 = inlined_call_operand.vmem [shape: f32[1,256], index: 12, kind: input, shape index: {}]   ;;  %s2596_s13 = inlined_call_operand.vmem [shape: f32[2,256], index: 13, kind: output, shape index: {}]  }
   0x1   :  { %s26_s27 = sshll.u32 %s2584_s1, 4  ;;  %s27_s27 = int_to_ptr.hbm [resolvable:$true] %s26_s27 }
   0x2   :  { %19 = vsyncpa [#allocation5], 0  ;;  %s2342_s28 = smov [#allocation2]   ;;  %s41_s15 = sshll.u32 %s2586_s3, 4  ;;  %s42_s15 = int_to_ptr.hbm [resolvable:$true] %s41_s15 }
   0x3   :  { %s28_s29 = sshll.u32 %s2342_s28, 4  ;;  %s2343_s16 = smov 256   ;;  %s29_s29 = int_to_ptr.vmem [resolvable:$true] %s28_s29 }
   0x4   :  { %s2344_s17 = smov 16   ;;  %s2345_s18 = smov [#allocation4]  }
   0x5   :  { %34 = dma.hbm_to_vmem [thread:$0]  %s27_s27, 8192, %s29_s29, [#allocation3], %s2343_s16, %s2343_s16, %s2344_s17  }
   0x6   :  { %s43_s19 = sshll.u32 %s2345_s18, 4  ;;  %s2346_s20 = smov 128   ;;  %s44_s19 = int_to_ptr.vmem [resolvable:$true] %s43_s19 }
   0x7   :  { %s2347_s21 = smov 8  }
   0x8   :  { %49 = dma.hbm_to_vmem [thread:$0]  %s42_s15, 8192, %s44_s19, [#allocation5], %s2346_s20, %s2346_s20, %s2347_s21  }
   0x9   :  { %2338 = dma.done.wait [#allocation3], 8192  }
   0xa   :  { %2339 = vsyncadd [#allocation3], 4294959104 }
   0xb   :  { %2340 = dma.done.wait [#allocation5], 8192  }
   0xc   :  { %2341 = vsyncadd [#allocation5], 4294959104  ;;  %v1591_v0 = vld [vmem:[#allocation2 + $0xe0] sm:$0xf]  ;;  %v2145_v1 = vld [vmem:[#allocation2 + $0xec] sm:$0xf0] }
   0xd   :  { %v1719_v2 = vld [vmem:[#allocation2 + $0x1e0] sm:$0xf]  ;;  %v1592_v3 = vor.u32 %v2145_v1, %v1591_v0  ;;  %v2177_v4 = vld [vmem:[#allocation2 + $0x1ec] sm:$0xf0]  ;;  %v2143_v5 = vld [vmem:[#allocation2 + $0xe4] sm:$0xf] }
   0xe   :  { %v1593_v6 = vld [vmem:[#allocation2 + $0xf0] sm:$0xf0]  ;;  %v1720_v7 = vor.u32 %v2177_v4, %v1719_v2  ;;  %v2175_v9 = vld [vmem:[#allocation2 + $0x1e4] sm:$0xf]  ;;  %v1575_v11 = vld [vmem:[#allocation2 + $0xc0] sm:$0xf] }
   0xf   :  { %v1596_v8 = vor.u32 %v2143_v5, %v1593_v6  ;;  %v1721_v10 = vld [vmem:[#allocation2 + $0x1f0] sm:$0xf0]  ;;  %480 = vmatpush.bf16.msra.mxu0 %v1592_v3  ;;  %v2141_v13 = vld [vmem:[#allocation2 + $0xcc] sm:$0xf0]  ;;  %v1703_v14 = vld [vmem:[#allocation2 + $0x1c0] sm:$0xf] }
  0x10   :  { %v1724_v12 = vor.u32 %v2175_v9, %v1721_v10  ;;  %v2173_v15 = vld [vmem:[#allocation2 + $0x1cc] sm:$0xf0]  ;;  %493 = vmatpush.bf16.msra.mxu1 %v1720_v7  ;;  %v1576_v16 = vor.u32 %v2141_v13, %v1575_v11  ;;  %v2139_v18 = vld [vmem:[#allocation2 + $0xc4] sm:$0xf]  ;;  %v1577_v19 = vld [vmem:[#allocation2 + $0xd0] sm:$0xf0] }
  0x11   :  { %506 = vmatpush.bf16.msra.mxu2 %v1596_v8  ;;  %v1704_v17 = vor.u32 %v2173_v15, %v1703_v14  ;;  %v2171_v20 = vld [vmem:[#allocation2 + $0x1c4] sm:$0xf]  ;;  %v1580_v21 = vor.u32 %v2139_v18, %v1577_v19  ;;  %v1705_v22 = vld [vmem:[#allocation2 + $0x1d0] sm:$0xf0]  ;;  %v1559_v23 = vld [vmem:[#allocation2 + $0xa0] sm:$0xf] }
  0x12   :  { %519 = vmatpush.bf16.msra.mxu3 %v1724_v12  ;;  %v2137_v24 = vld [vmem:[#allocation2 + $0xac] sm:$0xf0]  ;;  %v1708_v25 = vor.u32 %v2171_v20, %v1705_v22  ;;  %v1687_v26 = vld [vmem:[#allocation2 + $0x1a0] sm:$0xf]  ;;  %v2135_v28 = vld [vmem:[#allocation2 + $0xa4] sm:$0xf] }
  0x13   :  { %v2169_v27 = vld [vmem:[#allocation2 + $0x1ac] sm:$0xf0]  ;;  %481 = vmatpush.bf16.msra.mxu0 %v1576_v16  ;;  %v1560_v29 = vor.u32 %v2137_v24, %v1559_v23  ;;  %v1561_v30 = vld [vmem:[#allocation2 + $0xb0] sm:$0xf0]  ;;  %v2167_v31 = vld [vmem:[#allocation2 + $0x1a4] sm:$0xf] }
  0x14   :  { %v1689_v32 = vld [vmem:[#allocation2 + $0x1b0] sm:$0xf0]  ;;  %494 = vmatpush.bf16.msra.mxu1 %v1704_v17  ;;  %v1688_v33 = vor.u32 %v2169_v27, %v1687_v26  ;;  %v1564_v34 = vor.u32 %v2135_v28, %v1561_v30  ;;  %v1543_v35 = vld [vmem:[#allocation2 + $0x80] sm:$0xf]  ;;  %v2133_v36 = vld [vmem:[#allocation2 + $0x8c] sm:$0xf0] }
  0x15   :  { %507 = vmatpush.bf16.msra.mxu2 %v1580_v21  ;;  %v1671_v37 = vld [vmem:[#allocation2 + $0x180] sm:$0xf]  ;;  %v1692_v38 = vor.u32 %v2167_v31, %v1689_v32  ;;  %v2165_v39 = vld [vmem:[#allocation2 + $0x18c] sm:$0xf0]  ;;  %v2131_v40 = vld [vmem:[#allocation2 + $0x84] sm:$0xf]  ;;  %v1544_v44 = vor.u32 %v2133_v36, %v1543_v35 }
  0x16   :  { %520 = vmatpush.bf16.msra.mxu3 %v1708_v25  ;;  %v1545_v41 = vld [vmem:[#allocation2 + $0x90] sm:$0xf0]  ;;  %v2163_v42 = vld [vmem:[#allocation2 + $0x184] sm:$0xf]  ;;  %v1672_v45 = vor.u32 %v2165_v39, %v1671_v37  ;;  %v1527_v47 = vld [vmem:[#allocation2 + $0x60] sm:$0xf] }
  0x17   :  { %v1673_v43 = vld [vmem:[#allocation2 + $0x190] sm:$0xf0]  ;;  %482 = vmatpush.bf16.msra.mxu0 %v1560_v29  ;;  %v1548_v46 = vor.u32 %v2131_v40, %v1545_v41  ;;  %v2129_v48 = vld [vmem:[#allocation2 + $0x6c] sm:$0xf0]  ;;  %v1655_v49 = vld [vmem:[#allocation2 + $0x160] sm:$0xf] }
  0x18   :  { %495 = vmatpush.bf16.msra.mxu1 %v1688_v33  ;;  %v1676_v50 = vor.u32 %v2163_v42, %v1673_v43  ;;  %v2161_v51 = vld [vmem:[#allocation2 + $0x16c] sm:$0xf0]  ;;  %v2127_v52 = vld [vmem:[#allocation2 + $0x64] sm:$0xf]  ;;  %v1529_v53 = vld [vmem:[#allocation2 + $0x70] sm:$0xf0]  ;;  %v1528_v56 = vor.u32 %v2129_v48, %v1527_v47 }
  0x19   :  { %508 = vmatpush.bf16.msra.mxu2 %v1564_v34  ;;  %v2159_v54 = vld [vmem:[#allocation2 + $0x164] sm:$0xf]  ;;  %v1657_v55 = vld [vmem:[#allocation2 + $0x170] sm:$0xf0]  ;;  %v1656_v57 = vor.u32 %v2161_v51, %v1655_v49  ;;  %v1532_v58 = vor.u32 %v2127_v52, %v1529_v53  ;;  %v1511_v59 = vld [vmem:[#allocation2 + $0x40] sm:$0xf] }
  0x1a   :  { %521 = vmatpush.bf16.msra.mxu3 %v1692_v38  ;;  %v2125_v60 = vld [vmem:[#allocation2 + $0x4c] sm:$0xf0]  ;;  %v1639_v61 = vld [vmem:[#allocation2 + $0x140] sm:$0xf]  ;;  %v1660_v62 = vor.u32 %v2159_v54, %v1657_v55  ;;  %v2123_v0 = vld [vmem:[#allocation2 + $0x44] sm:$0xf] }
  0x1b   :  { %483 = vmatpush.bf16.msra.mxu0 %v1544_v44  ;;  %v2157_v63 = vld [vmem:[#allocation2 + $0x14c] sm:$0xf0]  ;;  %v1513_v1 = vld [vmem:[#allocation2 + $0x50] sm:$0xf0]  ;;  %v2155_v2 = vld [vmem:[#allocation2 + $0x144] sm:$0xf]  ;;  %v1512_v4 = vor.u32 %v2125_v60, %v1511_v59 }
  0x1c   :  { %496 = vmatpush.bf16.msra.mxu1 %v1672_v45  ;;  %v1641_v3 = vld [vmem:[#allocation2 + $0x150] sm:$0xf0]  ;;  %v1640_v5 = vor.u32 %v2157_v63, %v1639_v61  ;;  %v1516_v6 = vor.u32 %v2123_v0, %v1513_v1  ;;  %v1495_v7 = vld [vmem:[#allocation2 + $0x20] sm:$0xf]  ;;  %v2121_v8 = vld [vmem:[#allocation2 + $0x2c] sm:$0xf0] }
  0x1d   :  { %509 = vmatpush.bf16.msra.mxu2 %v1548_v46  ;;  %v1623_v9 = vld [vmem:[#allocation2 + $0x120] sm:$0xf]  ;;  %v1644_v10 = vor.u32 %v2155_v2, %v1641_v3  ;;  %v2153_v11 = vld [vmem:[#allocation2 + $0x12c] sm:$0xf0]  ;;  %v2119_v12 = vld [vmem:[#allocation2 + $0x24] sm:$0xf]  ;;  %v1496_v17 = vor.u32 %v2121_v8, %v1495_v7 }
  0x1e   :  { %522 = vmatpush.bf16.msra.mxu3 %v1676_v50  ;;  %v1497_v13 = vld [vmem:[#allocation2 + $0x30] sm:$0xf0]  ;;  %v2151_v14 = vld [vmem:[#allocation2 + $0x124] sm:$0xf]  ;;  %v1479_v16 = vld [vmem:[#allocation2] sm:$0xf]  ;;  %v1624_v21 = vor.u32 %v2153_v11, %v1623_v9 }
  0x1f   :  { %484 = vmatpush.bf16.msra.mxu0 %v1528_v56  ;;  %v1625_v15 = vld [vmem:[#allocation2 + $0x130] sm:$0xf0]  ;;  %v2117_v18 = vld [vmem:[#allocation2 + $0xc] sm:$0xf0]  ;;  %v1607_v19 = vld [vmem:[#allocation2 + $0x100] sm:$0xf]  ;;  %v1500_v22 = vor.u32 %v2119_v12, %v1497_v13 }
  0x20   :  { %497 = vmatpush.bf16.msra.mxu1 %v1656_v57  ;;  %v2149_v20 = vld [vmem:[#allocation2 + $0x10c] sm:$0xf0]  ;;  %v2115_v23 = vld [vmem:[#allocation2 + $0x4] sm:$0xf]  ;;  %v1481_v24 = vld [vmem:[#allocation2 + $0x10] sm:$0xf0]  ;;  %v1628_v26 = vor.u32 %v2151_v14, %v1625_v15  ;;  %v1480_v32 = vor.u32 %v2117_v18, %v1479_v16 }
  0x21   :  { %510 = vmatpush.bf16.msra.mxu2 %v1532_v58  ;;  %v77_v25 = vld [vmem:[%s2583_s0] sm:$0xf]  ;;  %v2147_v27 = vld [vmem:[#allocation2 + $0x104] sm:$0xf]  ;;  %v1609_v28 = vld [vmem:[#allocation2 + $0x110] sm:$0xf0]  ;;  %v1608_v36 = vor.u32 %v2149_v20, %v1607_v19  ;;  %v1484_v37 = vor.u32 %v2115_v23, %v1481_v24 }
  0x22   :  { %523 = vmatpush.bf16.msra.mxu3 %v1660_v62  ;;  %144 = vst [vmem:[#allocation1] ss:$4 sm:$0xff] %v77_v25  ;;  %v1599_v29 = vld [vmem:[#allocation2 + $0xe8] sm:$0xf]  ;;  %v2146_v30 = vld [vmem:[#allocation2 + $0xf4] sm:$0xf0]  ;;  %v1612_v40 = vor.u32 %v2147_v27, %v1609_v28 }
  0x23   :  { %485 = vmatpush.bf16.msra.mxu0 %v1512_v4  ;;  %v1727_v31 = vld [vmem:[#allocation2 + $0x1e8] sm:$0xf]  ;;  %v2178_v33 = vld [vmem:[#allocation2 + $0x1f4] sm:$0xf0]  ;;  %v2144_v34 = vld [vmem:[#allocation2 + $0xec] sm:$0xf]  ;;  %v1600_v41 = vor.u32 %v2146_v30, %v1599_v29 }
  0x24   :  { %498 = vmatpush.bf16.msra.mxu1 %v1640_v5  ;;  %v1601_v35 = vld [vmem:[#allocation2 + $0xf8] sm:$0xf0]  ;;  %v2176_v38 = vld [vmem:[#allocation2 + $0x1ec] sm:$0xf]  ;;  %v1583_v42 = vld [vmem:[#allocation2 + $0xc8] sm:$0xf]  ;;  %v1728_v44 = vor.u32 %v2178_v33, %v1727_v31 }
  0x25   :  { %511 = vmatpush.bf16.msra.mxu2 %v1516_v6  ;;  %v1729_v39 = vld [vmem:[#allocation2 + $0x1f8] sm:$0xf0]  ;;  %v2142_v43 = vld [vmem:[#allocation2 + $0xd4] sm:$0xf0]  ;;  %v1604_v45 = vor.u32 %v2144_v34, %v1601_v35  ;;  %v1711_v46 = vld [vmem:[#allocation2 + $0x1c8] sm:$0xf] }
  0x26   :  { %524 = vmatpush.bf16.msra.mxu3 %v1644_v10  ;;  %v2174_v47 = vld [vmem:[#allocation2 + $0x1d4] sm:$0xf0]  ;;  %v2140_v48 = vld [vmem:[#allocation2 + $0xcc] sm:$0xf]  ;;  %v1732_v49 = vor.u32 %v2176_v38, %v1729_v39  ;;  %v1585_v50 = vld [vmem:[#allocation2 + $0xd8] sm:$0xf0]  ;;  %v1584_v57 = vor.u32 %v2142_v43, %v1583_v42 }
  0x27   :  { %486 = vmatpush.bf16.msra.mxu0 %v1496_v17  ;;  %v2172_v51 = vld [vmem:[#allocation2 + $0x1cc] sm:$0xf]  ;;  %v1713_v52 = vld [vmem:[#allocation2 + $0x1d8] sm:$0xf0]  ;;  %v1712_v58 = vor.u32 %v2174_v47, %v1711_v46  ;;  %v1588_v59 = vor.u32 %v2140_v48, %v1585_v50  ;;  %v1567_v60 = vld [vmem:[#allocation2 + $0xa8] sm:$0xf] }
  0x28   :  { %499 = vmatpush.bf16.msra.mxu1 %v1624_v21  ;;  %v2138_v61 = vld [vmem:[#allocation2 + $0xb4] sm:$0xf0]  ;;  %v1695_v62 = vld [vmem:[#allocation2 + $0x1a8] sm:$0xf]  ;;  %v1716_v63 = vor.u32 %v2172_v51, %v1713_v52  ;;  %v2136_v1 = vld [vmem:[#allocation2 + $0xac] sm:$0xf] }
  0x29   :  { %512 = vmatpush.bf16.msra.mxu2 %v1500_v22  ;;  %v145_v53 = vld.sshfl [vmem:[#allocation1] sm:$0xff pattern:$0x73625140]  ;;  %v146_v54 = vld.sshfl [vmem:[#allocation1 + $0x8] sm:$0xff pattern:$0x73625140]  ;;  %v1568_v5 = vor.u32 %v2138_v61, %v1567_v60 }
  0x2a   :  { %525 = vmatpush.bf16.msra.mxu3 %v1628_v26  ;;  %v2427_v55 = vpack.c.bf16 %v145_v53, %v145_v53  ;;  %v2429_v56 = vpack.c.bf16 %v146_v54, %v146_v54  ;;  %v2170_v0 = vld [vmem:[#allocation2 + $0x1b4] sm:$0xf0]  ;;  %v1569_v2 = vld [vmem:[#allocation2 + $0xb8] sm:$0xf0]  ;;  %v2168_v3 = vld [vmem:[#allocation2 + $0x1ac] sm:$0xf] }
  0x2b   :  { %487 = vmatpush.bf16.msra.mxu0 %v1480_v32  ;;  %v1697_v4 = vld [vmem:[#allocation2 + $0x1b8] sm:$0xf0]  ;;  %v1696_v6 = vor.u32 %v2170_v0, %v1695_v62  ;;  %v1572_v7 = vor.u32 %v2136_v1, %v1569_v2  ;;  %v1551_v8 = vld [vmem:[#allocation2 + $0x88] sm:$0xf]  ;;  %v2134_v9 = vld [vmem:[#allocation2 + $0x94] sm:$0xf0] }
  0x2c   :  { %500 = vmatpush.bf16.msra.mxu1 %v1608_v36  ;;  %v1679_v10 = vld [vmem:[#allocation2 + $0x188] sm:$0xf]  ;;  %v1700_v11 = vor.u32 %v2168_v3, %v1697_v4  ;;  %v2166_v12 = vld [vmem:[#allocation2 + $0x194] sm:$0xf0]  ;;  %v2132_v13 = vld [vmem:[#allocation2 + $0x8c] sm:$0xf]  ;;  %v1552_v17 = vor.u32 %v2134_v9, %v1551_v8 }
  0x2d   :  { %513 = vmatpush.bf16.msra.mxu2 %v1484_v37  ;;  %v1553_v14 = vld [vmem:[#allocation2 + $0x98] sm:$0xf0]  ;;  %v2164_v15 = vld [vmem:[#allocation2 + $0x18c] sm:$0xf]  ;;  %v1680_v18 = vor.u32 %v2166_v12, %v1679_v10  ;;  %v1535_v20 = vld [vmem:[#allocation2 + $0x68] sm:$0xf] }
  0x2e   :  { %526 = vmatpush.bf16.msra.mxu3 %v1612_v40  ;;  %488 = vmatmul.bf16.vlgmr.msra.gmra.mxu0 %v2427_v55  ;;  %v1681_v16 = vld [vmem:[#allocation2 + $0x198] sm:$0xf0]  ;;  %v1556_v19 = vor.u32 %v2132_v13, %v1553_v14  ;;  %v2130_v21 = vld [vmem:[#allocation2 + $0x74] sm:$0xf0]  ;;  %v1663_v22 = vld [vmem:[#allocation2 + $0x168] sm:$0xf] }
  0x2f   :  { %532 = vmatpush.bf16.msrb.mxu0 %v1600_v41  ;;  %501 = vmatmul.bf16.vlgmr.msra.gmra.mxu1 %v2429_v56  ;;  %v1684_v23 = vor.u32 %v2164_v15, %v1681_v16  ;;  %v2162_v24 = vld [vmem:[#allocation2 + $0x174] sm:$0xf0]  ;;  %v2128_v25 = vld [vmem:[#allocation2 + $0x6c] sm:$0xf]  ;;  %v1537_v26 = vld [vmem:[#allocation2 + $0x78] sm:$0xf0]  ;;  %v1536_v29 = vor.u32 %v2130_v21, %v1535_v20 }
  0x30   :  { %545 = vmatpush.bf16.msrb.mxu1 %v1728_v44  ;;  %514 = vmatmul.bf16.vlgmr.msra.gmra.mxu2 %v2427_v55  ;;  %v2160_v27 = vld [vmem:[#allocation2 + $0x16c] sm:$0xf]  ;;  %v1665_v28 = vld [vmem:[#allocation2 + $0x178] sm:$0xf0]  ;;  %v1664_v30 = vor.u32 %v2162_v24, %v1663_v22  ;;  %v1540_v31 = vor.u32 %v2128_v25, %v1537_v26  ;;  %v1519_v32 = vld [vmem:[#allocation2 + $0x48] sm:$0xf] }
  0x31   :  { %558 = vmatpush.bf16.msrb.mxu2 %v1604_v45  ;;  %527 = vmatmul.bf16.vlgmr.msra.gmra.mxu3 %v2429_v56  ;;  %v2126_v33 = vld [vmem:[#allocation2 + $0x54] sm:$0xf0]  ;;  %v1647_v34 = vld [vmem:[#allocation2 + $0x148] sm:$0xf]  ;;  %v1668_v35 = vor.u32 %v2160_v27, %v1665_v28  ;;  %v2124_v37 = vld [vmem:[#allocation2 + $0x4c] sm:$0xf] }
  0x32   :  { %571 = vmatpush.bf16.msrb.mxu3 %v1732_v49  ;;  %v2158_v36 = vld [vmem:[#allocation2 + $0x154] sm:$0xf0]  ;;  %v1521_v38 = vld [vmem:[#allocation2 + $0x58] sm:$0xf0]  ;;  %v2156_v39 = vld [vmem:[#allocation2 + $0x14c] sm:$0xf]  ;;  %v1520_v41 = vor.u32 %v2126_v33, %v1519_v32 }
  0x33   :  { %533 = vmatpush.bf16.msrb.mxu0 %v1584_v57  ;;  %v1649_v40 = vld [vmem:[#allocation2 + $0x158] sm:$0xf0]  ;;  %v1503_v42 = vld [vmem:[#allocation2 + $0x28] sm:$0xf]  ;;  %v1648_v43 = vor.u32 %v2158_v36, %v1647_v34  ;;  %v1524_v44 = vor.u32 %v2124_v37, %v1521_v38  ;;  %v2122_v45 = vld [vmem:[#allocation2 + $0x34] sm:$0xf0] }
  0x34   :  { %546 = vmatpush.bf16.msrb.mxu1 %v1712_v58  ;;  %v1631_v46 = vld [vmem:[#allocation2 + $0x128] sm:$0xf]  ;;  %v2154_v47 = vld [vmem:[#allocation2 + $0x134] sm:$0xf0]  ;;  %v1652_v48 = vor.u32 %v2156_v39, %v1649_v40  ;;  %v2120_v49 = vld [vmem:[#allocation2 + $0x2c] sm:$0xf]  ;;  %v1504_v53 = vor.u32 %v2122_v45, %v1503_v42 }
  0x35   :  { %559 = vmatpush.bf16.msrb.mxu2 %v1588_v59  ;;  %v1505_v50 = vld [vmem:[#allocation2 + $0x38] sm:$0xf0]  ;;  %v2152_v51 = vld [vmem:[#allocation2 + $0x12c] sm:$0xf]  ;;  %v1487_v54 = vld [vmem:[#allocation2 + $0x8] sm:$0xf]  ;;  %v1632_v57 = vor.u32 %v2154_v47, %v1631_v46 }
  0x36   :  { %572 = vmatpush.bf16.msrb.mxu3 %v1716_v63  ;;  %v1633_v52 = vld [vmem:[#allocation2 + $0x138] sm:$0xf0]  ;;  %v1508_v58 = vor.u32 %v2120_v49, %v1505_v50  ;;  %v2118_v59 = vld [vmem:[#allocation2 + $0x14] sm:$0xf0]  ;;  %v1615_v60 = vld [vmem:[#allocation2 + $0x108] sm:$0xf] }
  0x37   :  { %534 = vmatpush.bf16.msrb.mxu0 %v1568_v5  ;;  %v2150_v61 = vld [vmem:[#allocation2 + $0x114] sm:$0xf0]  ;;  %v1636_v62 = vor.u32 %v2152_v51, %v1633_v52  ;;  %v2116_v63 = vld [vmem:[#allocation2 + $0xc] sm:$0xf]  ;;  %v1489_v0 = vld [vmem:[#allocation2 + $0x18] sm:$0xf0]  ;;  %v1488_v5 = vor.u32 %v2118_v59, %v1487_v54 }
  0x38   :  { %547 = vmatpush.bf16.msrb.mxu1 %v1696_v6  ;;  %v2148_v1 = vld [vmem:[#allocation2 + $0x10c] sm:$0xf]  ;;  %v1617_v2 = vld [vmem:[#allocation2 + $0x118] sm:$0xf0]  ;;  %v1791_v3 = vld [vmem:[#allocation4 + $0x70] sm:$0xf]  ;;  %v1616_v8 = vor.u32 %v2150_v61, %v1615_v60  ;;  %v1492_v9 = vor.u32 %v2116_v63, %v1489_v0 }
  0x39   :  { %560 = vmatpush.bf16.msrb.mxu2 %v1572_v7  ;;  %v2194_v4 = vld [vmem:[#allocation4 + $0x74] sm:$0xf0]  ;;  %v1855_v6 = vld [vmem:[#allocation4 + $0xf0] sm:$0xf]  ;;  %v1620_v10 = vor.u32 %v2148_v1, %v1617_v2  ;;  %v1783_v14 = vld [vmem:[#allocation4 + $0x60] sm:$0xf] }
  0x3a   :  { %573 = vmatpush.bf16.msrb.mxu3 %v1700_v11  ;;  %v2210_v7 = vld [vmem:[#allocation4 + $0xf4] sm:$0xf0]  ;;  %v1792_v11 = vor.u32 %v2194_v4, %v1791_v3  ;;  %v1919_v12 = vld [vmem:[#allocation4 + $0x170] sm:$0xf]  ;;  %v2192_v15 = vld [vmem:[#allocation4 + $0x64] sm:$0xf0] }
  0x3b   :  { %535 = vmatpush.bf16.msrb.mxu0 %v1552_v17  ;;  %v2226_v13 = vld [vmem:[#allocation4 + $0x174] sm:$0xf0]  ;;  %v1856_v16 = vor.u32 %v2210_v7, %v1855_v6  ;;  %v1847_v17 = vld [vmem:[#allocation4 + $0xe0] sm:$0xf]  ;;  %v1784_v20 = vor.u32 %v2192_v15, %v1783_v14  ;;  %v2224_v22 = vld [vmem:[#allocation4 + $0x164] sm:$0xf0] }
  0x3c   :  { %548 = vmatpush.bf16.msrb.mxu1 %v1680_v18  ;;  %v2208_v18 = vld [vmem:[#allocation4 + $0xe4] sm:$0xf0]  ;;  %v1911_v21 = vld [vmem:[#allocation4 + $0x160] sm:$0xf]  ;;  %v2190_v24 = vld [vmem:[#allocation4 + $0x54] sm:$0xf0] }
  0x3d   :  { %561 = vmatpush.bf16.msrb.mxu2 %v1556_v19  ;;  %v1920_v19 = vor.u32 %v2226_v13, %v1919_v12  ;;  %v1848_v25 = vor.u32 %v2208_v18, %v1847_v17  ;;  %v1839_v26 = vld [vmem:[#allocation4 + $0xd0] sm:$0xf]  ;;  %v2206_v27 = vld [vmem:[#allocation4 + $0xd4] sm:$0xf0]  ;;  %v1912_v28 = vor.u32 %v2224_v22, %v1911_v21  ;;  %v1831_v33 = vld [vmem:[#allocation4 + $0xc0] sm:$0xf] }
  0x3e   :  { %574 = vmatpush.bf16.msrb.mxu3 %v1684_v23  ;;  %v1775_v23 = vld [vmem:[#allocation4 + $0x50] sm:$0xf]  ;;  %v1840_v32 = vor.u32 %v2206_v27, %v1839_v26  ;;  %v2204_v34 = vld [vmem:[#allocation4 + $0xc4] sm:$0xf0]  ;;  %v2202_v39 = vld [vmem:[#allocation4 + $0xb4] sm:$0xf0] }
  0x3f   :  { %536 = vmatpush.bf16.msrb.mxu0 %v1536_v29  ;;  %v1776_v29 = vor.u32 %v2190_v24, %v1775_v23  ;;  %v1759_v36 = vld [vmem:[#allocation4 + $0x30] sm:$0xf]  ;;  %v1832_v37 = vor.u32 %v2204_v34, %v1831_v33  ;;  %v1751_v40 = vld [vmem:[#allocation4 + $0x20] sm:$0xf]  ;;  %v2182_v47 = vld [vmem:[#allocation4 + $0x14] sm:$0xf0] }
  0x40   :  { %549 = vmatpush.bf16.msrb.mxu1 %v1664_v30  ;;  %v1767_v30 = vld [vmem:[#allocation4 + $0x40] sm:$0xf]  ;;  %v1823_v38 = vld [vmem:[#allocation4 + $0xb0] sm:$0xf]  ;;  %v2198_v50 = vld [vmem:[#allocation4 + $0x94] sm:$0xf0] }
  0x41   :  { %562 = vmatpush.bf16.msrb.mxu2 %v1540_v31  ;;  %v2188_v31 = vld [vmem:[#allocation4 + $0x44] sm:$0xf0]  ;;  %v1824_v42 = vor.u32 %v2202_v39, %v1823_v38  ;;  %v1743_v46 = vld [vmem:[#allocation4 + $0x10] sm:$0xf]  ;;  %v1735_v52 = vld [vmem:[#allocation4] sm:$0xf] }
  0x42   :  { %575 = vmatpush.bf16.msrb.mxu3 %v1668_v35  ;;  %v1768_v35 = vor.u32 %v2188_v31, %v1767_v30  ;;  %v1807_v49 = vld [vmem:[#allocation4 + $0x90] sm:$0xf]  ;;  %v1744_v51 = vor.u32 %v2182_v47, %v1743_v46  ;;  %v2193_v54 = vld [vmem:[#allocation4 + $0x74] sm:$0xf]  ;;  %v1799_v59 = vld [vmem:[#allocation4 + $0x80] sm:$0xf] }
  0x43   :  { %537 = vmatpush.bf16.msrb.mxu0 %v1520_v41  ;;  %v2184_v41 = vld [vmem:[#allocation4 + $0x24] sm:$0xf0]  ;;  %v2191_v0 = vld [vmem:[#allocation4 + $0x64] sm:$0xf]  ;;  %v1785_v1 = vld [vmem:[#allocation4 + $0x68] sm:$0xf0] }
  0x44   :  { %550 = vmatpush.bf16.msrb.mxu1 %v1648_v43  ;;  %v1815_v43 = vld [vmem:[#allocation4 + $0xa0] sm:$0xf]  ;;  %v1752_v45 = vor.u32 %v2184_v41, %v1751_v40  ;;  %v2196_v60 = vld [vmem:[#allocation4 + $0x84] sm:$0xf0]  ;;  %v1788_v2 = vor.u32 %v2191_v0, %v1785_v1  ;;  %v1983_v3 = vld [vmem:[#allocation4 + $0x1f0] sm:$0xf] }
  0x45   :  { %563 = vmatpush.bf16.msrb.mxu2 %v1524_v44  ;;  %v2200_v44 = vld [vmem:[#allocation4 + $0xa4] sm:$0xf0]  ;;  %v1800_v63 = vor.u32 %v2196_v60, %v1799_v59  ;;  %v2242_v4 = vld [vmem:[#allocation4 + $0x1f4] sm:$0xf0]  ;;  %v1857_v7 = vld [vmem:[#allocation4 + $0xf8] sm:$0xf0] }
  0x46   :  { %576 = vmatpush.bf16.msrb.mxu3 %v1652_v48  ;;  %v1816_v48 = vor.u32 %v2200_v44, %v1815_v43  ;;  %v1984_v6 = vor.u32 %v2242_v4, %v1983_v3  ;;  %v1777_v13 = vld [vmem:[#allocation4 + $0x58] sm:$0xf0]  ;;  %v1975_v15 = vld [vmem:[#allocation4 + $0x1e0] sm:$0xf]  ;;  %v2207_v17 = vld [vmem:[#allocation4 + $0xe4] sm:$0xf] }
  0x47   :  { %538 = vmatpush.bf16.msrb.mxu0 %v1504_v53  ;;  %v2180_v53 = vld [vmem:[#allocation4 + $0x4] sm:$0xf0]  ;;  %v1895_v21 = vld [vmem:[#allocation4 + $0x140] sm:$0xf]  ;;  %v2187_v23 = vld [vmem:[#allocation4 + $0x44] sm:$0xf] }
  0x48   :  { %551 = vmatpush.bf16.msrb.mxu1 %v1632_v57  ;;  %v1808_v57 = vor.u32 %v2198_v50, %v1807_v49  ;;  %v1736_v61 = vor.u32 %v2180_v53, %v1735_v52  ;;  %v2220_v22 = vld [vmem:[#allocation4 + $0x144] sm:$0xf0]  ;;  %v1967_v27 = vld [vmem:[#allocation4 + $0x1d0] sm:$0xf]  ;;  %v2205_v30 = vld [vmem:[#allocation4 + $0xd4] sm:$0xf] }
  0x49   :  { %564 = vmatpush.bf16.msrb.mxu2 %v1508_v58  ;;  %v1793_v58 = vld [vmem:[#allocation4 + $0x78] sm:$0xf0]  ;;  %v1896_v24 = vor.u32 %v2220_v22, %v1895_v21  ;;  %v1887_v33 = vld [vmem:[#allocation4 + $0x130] sm:$0xf]  ;;  %v2218_v34 = vld [vmem:[#allocation4 + $0x134] sm:$0xf0] }
  0x4a   :  { %577 = vmatpush.bf16.msrb.mxu3 %v1636_v62  ;;  %v1796_v62 = vor.u32 %v2193_v54, %v1793_v58  ;;  %v1841_v31 = vld [vmem:[#allocation4 + $0xd8] sm:$0xf0]  ;;  %v1959_v38 = vld [vmem:[#allocation4 + $0x1c0] sm:$0xf]  ;;  %v2236_v39 = vld [vmem:[#allocation4 + $0x1c4] sm:$0xf0] }
  0x4b   :  { %539 = vmatpush.bf16.msrb.mxu0 %v1488_v5  ;;  %v2209_v5 = vld [vmem:[#allocation4 + $0xf4] sm:$0xf]  ;;  %v1960_v40 = vor.u32 %v2236_v39, %v1959_v38  ;;  %v1833_v41 = vld [vmem:[#allocation4 + $0xc8] sm:$0xf0]  ;;  %v1879_v43 = vld [vmem:[#allocation4 + $0x120] sm:$0xf] }
  0x4c   :  { %552 = vmatpush.bf16.msrb.mxu1 %v1616_v8  ;;  %v1860_v8 = vor.u32 %v2209_v5, %v1857_v7  ;;  %v2216_v44 = vld [vmem:[#allocation4 + $0x124] sm:$0xf0]  ;;  %v1753_v47 = vld [vmem:[#allocation4 + $0x28] sm:$0xf0]  ;;  %v1951_v49 = vld [vmem:[#allocation4 + $0x1b0] sm:$0xf] }
  0x4d   :  { %565 = vmatpush.bf16.msrb.mxu2 %v1492_v9  ;;  %v1903_v9 = vld [vmem:[#allocation4 + $0x150] sm:$0xf]  ;;  %v1880_v46 = vor.u32 %v2216_v44, %v1879_v43  ;;  %v2234_v50 = vld [vmem:[#allocation4 + $0x1b4] sm:$0xf0]  ;;  %v1825_v53 = vld [vmem:[#allocation4 + $0xb8] sm:$0xf0] }
  0x4e   :  { %578 = vmatpush.bf16.msrb.mxu3 %v1620_v10  ;;  %540 = vmatmul.bf16.vlgmr.msrb.gmra.mxu0 %v2427_v55  ;;  %v2222_v10 = vld [vmem:[#allocation4 + $0x154] sm:$0xf0]  ;;  %v1952_v52 = vor.u32 %v2234_v50, %v1951_v49  ;;  %v1871_v54 = vld [vmem:[#allocation4 + $0x110] sm:$0xf]  ;;  %v2181_v60 = vld [vmem:[#allocation4 + $0x14] sm:$0xf] }
  0x4f   :  { %982 = vmatpush.bf16.msra.mxu0 %v1792_v11  ;;  %553 = vmatmul.bf16.vlgmr.msrb.gmra.mxu1 %v2429_v56  ;;  %v2189_v11 = vld [vmem:[#allocation4 + $0x54] sm:$0xf]  ;;  %v1904_v12 = vor.u32 %v2222_v10, %v1903_v9  ;;  %v2232_v0 = vld [vmem:[#allocation4 + $0x1a4] sm:$0xf0]  ;;  %v2199_v1 = vld [vmem:[#allocation4 + $0xa4] sm:$0xf] }
  0x50   :  { %995 = vmatpush.bf16.msra.mxu1 %v1856_v16  ;;  %566 = vmatmul.bf16.vlgmr.msrb.gmra.mxu2 %v2427_v55  ;;  %v2186_v55 = vld [vmem:[#allocation4 + $0x34] sm:$0xf0]  ;;  %v1780_v14 = vor.u32 %v2189_v11, %v1777_v13  ;;  %v2240_v16 = vld [vmem:[#allocation4 + $0x1e4] sm:$0xf0]  ;;  %v1863_v5 = vld [vmem:[#allocation4 + $0x100] sm:$0xf] }
  0x51   :  { %579 = vmatmul.bf16.vlgmr.msrb.gmra.mxu3 %v2429_v56  ;;  %1008 = vmatpush.bf16.msra.mxu2 %v1920_v19  ;;  %v1760_v56 = vor.u32 %v2186_v55, %v1759_v36  ;;  %v1976_v18 = vor.u32 %v2240_v16, %v1975_v15  ;;  %v1849_v19 = vld [vmem:[#allocation4 + $0xe8] sm:$0xf0]  ;;  %v1888_v36 = vor.u32 %v2218_v34, %v1887_v33  ;;  %v1761_v55 = vld [vmem:[#allocation4 + $0x38] sm:$0xf0]  ;;  %v2179_v7 = vld [vmem:[#allocation4 + $0x4] sm:$0xf] }
  0x52   :  { %1021 = vmatpush.bf16.msra.mxu3 %v1984_v6  ;;  %v2212_v6 = vld [vmem:[#allocation4 + $0x104] sm:$0xf0]  ;;  %v1737_v9 = vld [vmem:[#allocation4 + $0x8] sm:$0xf0]  ;;  %v2225_v10 = vld [vmem:[#allocation4 + $0x174] sm:$0xf] }
  0x53   :  { %983 = vmatpush.bf16.msra.mxu0 %v1784_v20  ;;  %v1852_v20 = vor.u32 %v2207_v17, %v1849_v19  ;;  %v1921_v11 = vld [vmem:[#allocation4 + $0x178] sm:$0xf0]  ;;  %v2230_v15 = vld [vmem:[#allocation4 + $0x194] sm:$0xf0]  ;;  %v2197_v16 = vld [vmem:[#allocation4 + $0x94] sm:$0xf] }
  0x54   :  { %996 = vmatpush.bf16.msra.mxu1 %v1848_v25  ;;  %v1769_v25 = vld [vmem:[#allocation4 + $0x48] sm:$0xf0]  ;;  %v1924_v13 = vor.u32 %v2225_v10, %v1921_v11  ;;  %v2223_v21 = vld [vmem:[#allocation4 + $0x164] sm:$0xf]  ;;  %v2221_v34 = vld [vmem:[#allocation4 + $0x154] sm:$0xf] }
  0x55   :  { %1009 = vmatpush.bf16.msra.mxu2 %v1912_v28  ;;  %v1772_v26 = vor.u32 %v2187_v23, %v1769_v25  ;;  %v2238_v28 = vld [vmem:[#allocation4 + $0x1d4] sm:$0xf0]  ;;  %v1913_v22 = vld [vmem:[#allocation4 + $0x168] sm:$0xf0]  ;;  %v1927_v23 = vld [vmem:[#allocation4 + $0x180] sm:$0xf] }
  0x56   :  { %1022 = vmatpush.bf16.msra.mxu3 %v1976_v18  ;;  %v1809_v18 = vld [vmem:[#allocation4 + $0x98] sm:$0xf0]  ;;  %v2228_v25 = vld [vmem:[#allocation4 + $0x184] sm:$0xf0]  ;;  %v1977_v38 = vld [vmem:[#allocation4 + $0x1e8] sm:$0xf0] }
  0x57   :  { %984 = vmatpush.bf16.msra.mxu0 %v1776_v29  ;;  %v1968_v29 = vor.u32 %v2238_v28, %v1967_v27  ;;  %v1812_v19 = vor.u32 %v2197_v16, %v1809_v18  ;;  %v1801_v27 = vld [vmem:[#allocation4 + $0x88] sm:$0xf0]  ;;  %v1928_v28 = vor.u32 %v2228_v25, %v1927_v23  ;;  %v2217_v50 = vld [vmem:[#allocation4 + $0x134] sm:$0xf]  ;;  %v2231_v10 = vld [vmem:[#allocation4 + $0x1a4] sm:$0xf] }
  0x58   :  { %997 = vmatpush.bf16.msra.mxu1 %v1840_v32  ;;  %v1844_v32 = vor.u32 %v2205_v30, %v1841_v31  ;;  %v2241_v30 = vld [vmem:[#allocation4 + $0x1f4] sm:$0xf]  ;;  %v1985_v31 = vld [vmem:[#allocation4 + $0x1f8] sm:$0xf0]  ;;  %v1929_v25 = vld [vmem:[#allocation4 + $0x188] sm:$0xf0] }
  0x59   :  { %1010 = vmatpush.bf16.msra.mxu2 %v1904_v12  ;;  %v1740_v12 = vor.u32 %v2179_v7, %v1737_v9  ;;  %v1988_v33 = vor.u32 %v2241_v30, %v1985_v31  ;;  %v1873_v9 = vld [vmem:[#allocation4 + $0x118] sm:$0xf0]  ;;  %vm1286_vm0 = vcmask 523264   ;;  %vm1324_vm1 = vcmask 261120  }
  0x5a   :  { %1023 = vmatpush.bf16.msra.mxu3 %v1968_v29  ;;  %vm1467_vm9 = vcmask 1041408  }
  0x5b   :  { %985 = vmatpush.bf16.msra.mxu0 %v1768_v35  ;;  %v2185_v35 = vld [vmem:[#allocation4 + $0x34] sm:$0xf] }
  0x5c   :  { %998 = vmatpush.bf16.msra.mxu1 %v1832_v37  ;;  %v1764_v37 = vor.u32 %v2185_v35, %v1761_v55  ;;  %v1905_v35 = vld [vmem:[#allocation4 + $0x158] sm:$0xf0] }
  0x5d   :  { %1011 = vmatpush.bf16.msra.mxu2 %v1896_v24  ;;  %v1916_v24 = vor.u32 %v2223_v21, %v1913_v22  ;;  %v1937_v21 = vld [vmem:[#allocation4 + $0x198] sm:$0xf0] }
  0x5e   :  { %1024 = vmatpush.bf16.msra.mxu3 %v1960_v40 }
  0x5f   :  { %986 = vmatpush.bf16.msra.mxu0 %v1760_v56  ;;  %v2203_v56 = vld [vmem:[#allocation4 + $0xc4] sm:$0xf] }
  0x60   :  { %999 = vmatpush.bf16.msra.mxu1 %v1824_v42  ;;  %v1836_v42 = vor.u32 %v2203_v56, %v1833_v41  ;;  %v2219_v41 = vld [vmem:[#allocation4 + $0x144] sm:$0xf] }
  0x61   :  { %1012 = vmatpush.bf16.msra.mxu2 %v1888_v36  ;;  %v1908_v36 = vor.u32 %v2221_v34, %v1905_v35 }
  0x62   :  { %1025 = vmatpush.bf16.msra.mxu3 %v1952_v52 }
  0x63   :  { %987 = vmatpush.bf16.msra.mxu0 %v1752_v45  ;;  %v2183_v45 = vld [vmem:[#allocation4 + $0x24] sm:$0xf] }
  0x64   :  { %1000 = vmatpush.bf16.msra.mxu1 %v1816_v48  ;;  %v1756_v48 = vor.u32 %v2183_v45, %v1753_v47  ;;  %v1969_v47 = vld [vmem:[#allocation4 + $0x1d8] sm:$0xf0] }
  0x65   :  { %1013 = vmatpush.bf16.msra.mxu2 %v1880_v46  ;;  %v2237_v46 = vld [vmem:[#allocation4 + $0x1d4] sm:$0xf] }
  0x66   :  { %v1972_v49 = vor.u32 %v2237_v46, %v1969_v47  ;;  %v2246_v46 = vld [vmem:[%s2588_s5 + $0x18] sm:$0xff] }
  0x67   :  { %988 = vmatpush.bf16.msra.mxu0 %v1744_v51  ;;  %v2201_v51 = vld [vmem:[#allocation4 + $0xb4] sm:$0xf] }
  0x68   :  { %1001 = vmatpush.bf16.msra.mxu1 %v1808_v57  ;;  %v2214_v57 = vld [vmem:[#allocation4 + $0x114] sm:$0xf0]  ;;  %v1828_v58 = vor.u32 %v2201_v51, %v1825_v53  ;;  %v1889_v51 = vld [vmem:[#allocation4 + $0x138] sm:$0xf0]  ;;  %v2258_v47 = vld [vmem:[%s2588_s5 + $0x78] sm:$0xff] }
  0x69   :  { %v1872_v59 = vor.u32 %v2214_v57, %v1871_v54  ;;  %v1892_v54 = vor.u32 %v2217_v50, %v1889_v51  ;;  %v2257_v50 = vld [vmem:[%s2588_s5 + $0x70] sm:$0xff] }
  0x6b   :  { %989 = vmatpush.bf16.msra.mxu0 %v1736_v61  ;;  %v1745_v61 = vld [vmem:[#allocation4 + $0x18] sm:$0xf0]  ;;  %1014 = vmatpush.bf16.msra.mxu2 %v1872_v59 }
  0x6c   :  { %1002 = vmatpush.bf16.msra.mxu1 %v1800_v63  ;;  %v1748_v63 = vor.u32 %v2181_v60, %v1745_v61  ;;  %v2235_v60 = vld [vmem:[#allocation4 + $0x1c4] sm:$0xf]  ;;  %v1961_v61 = vld [vmem:[#allocation4 + $0x1c8] sm:$0xf0] }
  0x6f   :  { %1034 = vmatpush.bf16.msrb.mxu0 %v1796_v62  ;;  %v1943_v62 = vld [vmem:[#allocation4 + $0x1a0] sm:$0xf] }
  0x70   :  { %1047 = vmatpush.bf16.msrb.mxu1 %v1860_v8  ;;  %v1944_v3 = vor.u32 %v2232_v0, %v1943_v62  ;;  %v1864_v8 = vor.u32 %v2212_v6, %v1863_v5  ;;  %v2233_v5 = vld [vmem:[#allocation4 + $0x1b4] sm:$0xf]  ;;  %v1953_v6 = vld [vmem:[#allocation4 + $0x1b8] sm:$0xf0] }
  0x71   :  { %v1956_v7 = vor.u32 %v2233_v5, %v1953_v6 }
  0x72   :  { %1026 = vmatpush.bf16.msra.mxu3 %v1944_v3  ;;  %1015 = vmatpush.bf16.msra.mxu2 %v1864_v8  ;;  %v2213_v8 = vld [vmem:[#allocation4 + $0x114] sm:$0xf] }
  0x73   :  { %1035 = vmatpush.bf16.msrb.mxu0 %v1788_v2  ;;  %v1817_v2 = vld [vmem:[#allocation4 + $0xa8] sm:$0xf0] }
  0x74   :  { %1048 = vmatpush.bf16.msrb.mxu1 %v1852_v20  ;;  %v1820_v4 = vor.u32 %v2199_v1, %v1817_v2  ;;  %v2442_v20 = vld [vmem:[%s2585_s2] sm:$0xf]  ;;  %v2215_v1 = vld [vmem:[#allocation4 + $0x124] sm:$0xf]  ;;  %v1881_v2 = vld [vmem:[#allocation4 + $0x128] sm:$0xf0] }
  0x75   :  { %v153_v45 = vperm.slane %v2442_v20, 1  ;;  %v1884_v3 = vor.u32 %v2215_v1, %v1881_v2  ;;  %v2252_v1 = vld [vmem:[%s2588_s5 + $0x48] sm:$0xff]  ;;  %v652_v2 = vld [vmem:[%s2587_s4] sm:$0x3] }
  0x76   :  { %1060 = vmatpush.bf16.msrb.mxu2 %v1924_v13  ;;  %v1945_v13 = vld [vmem:[#allocation4 + $0x1a8] sm:$0xf0] }
  0x77   :  { %1036 = vmatpush.bf16.msrb.mxu0 %v1780_v14  ;;  %v1935_v14 = vld [vmem:[#allocation4 + $0x190] sm:$0xf] }
  0x78   :  { %1049 = vmatpush.bf16.msrb.mxu1 %v1844_v32  ;;  %v1936_v17 = vor.u32 %v2230_v15, %v1935_v14  ;;  %v152_v32 = vperm.slane %v2442_v20, 0  ;;  %v2211_v14 = vld [vmem:[#allocation4 + $0x104] sm:$0xf]  ;;  %v1865_v15 = vld [vmem:[#allocation4 + $0x108] sm:$0xf0] }
  0x79   :  { %v1868_v22 = vor.u32 %v2211_v14, %v1865_v15  ;;  %v659_v15 = vperm.slane %v652_v2, 1 }
  0x7a   :  { %1027 = vmatpush.bf16.msra.mxu3 %v1936_v17  ;;  %1061 = vmatpush.bf16.msrb.mxu2 %v1916_v24  ;;  %v1948_v17 = vor.u32 %v2231_v10, %v1945_v13  ;;  %v2227_v24 = vld [vmem:[#allocation4 + $0x184] sm:$0xf] }
  0x7b   :  { %1037 = vmatpush.bf16.msrb.mxu0 %v1772_v26  ;;  %v2195_v26 = vld [vmem:[#allocation4 + $0x84] sm:$0xf] }
  0x7c   :  { %1050 = vmatpush.bf16.msrb.mxu1 %v1836_v42  ;;  %v1804_v29 = vor.u32 %v2195_v26, %v1801_v27  ;;  %v1897_v42 = vld [vmem:[#allocation4 + $0x148] sm:$0xf0]  ;;  %v1932_v26 = vor.u32 %v2227_v24, %v1929_v25  ;;  %v154_v27 = vperm.slane %v2442_v20, 2 }
  0x7d   :  { %v1900_v44 = vor.u32 %v2219_v41, %v1897_v42 }
  0x7e   :  { %1028 = vmatpush.bf16.msra.mxu3 %v1928_v28  ;;  %1062 = vmatpush.bf16.msrb.mxu2 %v1908_v36 }
  0x7f   :  { %1038 = vmatpush.bf16.msrb.mxu0 %v1764_v37  ;;  %v2239_v37 = vld [vmem:[#allocation4 + $0x1e4] sm:$0xf] }
  0x80   :  { %1051 = vmatpush.bf16.msrb.mxu1 %v1828_v58  ;;  %v1980_v40 = vor.u32 %v2239_v37, %v1977_v38 }
  0x82   :  { %1073 = vmatpush.bf16.msrb.mxu3 %v1988_v33  ;;  %1063 = vmatpush.bf16.msrb.mxu2 %v1900_v44  ;;  %v2248_v44 = vld [vmem:[%s2588_s5 + $0x28] sm:$0xff] }
  0x83   :  { %1039 = vmatpush.bf16.msrb.mxu0 %v1756_v48 }
  0x84   :  { %1052 = vmatpush.bf16.msrb.mxu1 %v1820_v4 }
  0x86   :  { %1074 = vmatpush.bf16.msrb.mxu3 %v1980_v40  ;;  %1064 = vmatpush.bf16.msrb.mxu2 %v1892_v54  ;;  %v2256_v54 = vld [vmem:[%s2588_s5 + $0x68] sm:$0xff] }
  0x87   :  { %1040 = vmatpush.bf16.msrb.mxu0 %v1748_v63  ;;  %v1964_v63 = vor.u32 %v2235_v60, %v1961_v61  ;;  %v2254_v61 = vld [vmem:[%s2588_s5 + $0x58] sm:$0xff] }
  0x88   :  { %1053 = vmatpush.bf16.msrb.mxu1 %v1812_v19  ;;  %v2229_v19 = vld [vmem:[#allocation4 + $0x194] sm:$0xf] }
  0x89   :  { %v1940_v23 = vor.u32 %v2229_v19, %v1937_v21 }
  0x8a   :  { %1075 = vmatpush.bf16.msrb.mxu3 %v1972_v49  ;;  %1065 = vmatpush.bf16.msrb.mxu2 %v1884_v3  ;;  %v2245_v49 = vld [vmem:[%s2588_s5 + $0x10] sm:$0xff]  ;;  %v2251_v3 = vld [vmem:[%s2588_s5 + $0x40] sm:$0xff] }
  0x8b   :  { %1041 = vmatpush.bf16.msrb.mxu0 %v1740_v12  ;;  %v1876_v12 = vor.u32 %v2213_v8, %v1873_v9 }
  0x8c   :  { %1054 = vmatpush.bf16.msrb.mxu1 %v1804_v29 }
  0x8e   :  { %1076 = vmatpush.bf16.msrb.mxu3 %v1964_v63  ;;  %1066 = vmatpush.bf16.msrb.mxu2 %v1876_v12 }
  0x92   :  { %1077 = vmatpush.bf16.msrb.mxu3 %v1956_v7  ;;  %1067 = vmatpush.bf16.msrb.mxu2 %v1868_v22 }
  0x96   :  { %1078 = vmatpush.bf16.msrb.mxu3 %v1948_v17 }
  0x9a   :  { %1079 = vmatpush.bf16.msrb.mxu3 %v1940_v23 }
  0x9e   :  { %1080 = vmatpush.bf16.msrb.mxu3 %v1932_v26 }
  0xab   :  { %v489_v55 = vpop.f32.mrf.mxu0 }
  0xac   :  { %v490_v39 = vadd.f32 %v489_v55, %v152_v32  ;;  %v502_v56 = vpop.f32.mrf.mxu1  ;;  %v155_v32 = vperm.slane %v2442_v20, 3  ;;  %v2250_v20 = vld [vmem:[%s2588_s5 + $0x38] sm:$0xff] }
  0xae   :  { %v503_v43 = vadd.f32 %v502_v56, %v490_v39 }
  0xb0   :  { %v584_v48 = vmax.f32 %v503_v43, 0.0  ;;  %v2249_v43 = vld [vmem:[%s2588_s5 + $0x30] sm:$0xff] }
  0xb2   :  { %v653_v52 = vpack.c.bf16 %v584_v48, %v584_v48 }
  0xb3   :  { %v515_v53 = vpop.f32.mrf.mxu2  ;;  %v491_v59 = vpop.f32.mrf.mxu0 }
  0xb4   :  { %v516_v57 = vadd.f32 %v515_v53, %v153_v45  ;;  %v528_v58 = vpop.f32.mrf.mxu3  ;;  %990 = vmatmul.bf16.vlgmr.msra.gmra.mxu0 %v653_v52  ;;  %v504_v62 = vpop.f32.mrf.mxu1  ;;  %v2247_v45 = vld [vmem:[%s2588_s5 + $0x20] sm:$0xff]  ;;  %v2244_v53 = vld [vmem:[%s2588_s5 + $0x8] sm:$0xff] }
  0xb5   :  { %1222 = vmatpush.bf16.msra.mxu0 %v2250_v20  ;;  %v2253_v62 = vld [vmem:[%s2588_s5 + $0x50] sm:$0xff] }
  0xb6   :  { %v529_v0 = vadd.f32 %v528_v58, %v516_v57  ;;  %v2243_v57 = vld [vmem:[%s2588_s5] sm:$0xff]  ;;  %v2105_v20 = vld [vmem:[%s2594_s11 + $0x30] sm:$0xf] }
  0xb7   :  { %v2255_v58 = vld [vmem:[%s2588_s5 + $0x60] sm:$0xff] }
  0xb8   :  { %v585_v4 = vmax.f32 %v529_v0, 0.0 }
  0xb9   :  { %1223 = vmatpush.bf16.msra.mxu0 %v2249_v43 }
  0xba   :  { %v654_v11 = vpack.c.bf16 %v585_v4, %v585_v4  ;;  %v658_v4 = vperm.slane %v652_v2, 0  ;;  %v2083_v2 = vld [vmem:[%s2594_s11 + $0x8] sm:$0xf0] }
  0xbb   :  { %v517_v16 = vpop.f32.mrf.mxu2 }
  0xbc   :  { %1003 = vmatmul.bf16.vlgmr.msra.gmra.mxu1 %v654_v11  ;;  %v530_v18 = vpop.f32.mrf.mxu3 }
  0xbd   :  { %1224 = vmatpush.bf16.msra.mxu0 %v2248_v44  ;;  %1235 = vmatpush.bf16.msra.mxu1 %v2258_v47  ;;  %v2272_v44 = vld [vmem:[%s2594_s11 + $0x34] sm:$0xf0] }
  0xbe   :  { %v2106_v47 = vor.u32 %v2272_v44, %v2105_v20 }
  0xc1   :  { %1225 = vmatpush.bf16.msra.mxu0 %v2247_v45  ;;  %1236 = vmatpush.bf16.msra.mxu1 %v2257_v50  ;;  %v2269_v45 = vld [vmem:[%s2594_s11 + $0x24] sm:$0xf] }
  0xc4   :  { %1042 = vmatmul.bf16.vlgmr.msrb.gmra.mxu0 %v653_v52 }
  0xc5   :  { %1226 = vmatpush.bf16.msra.mxu0 %v2246_v46  ;;  %1237 = vmatpush.bf16.msra.mxu1 %v2256_v54  ;;  %v2099_v46 = vld [vmem:[%s2594_s11 + $0x28] sm:$0xf0] }
  0xc6   :  { %v2102_v50 = vor.u32 %v2269_v45, %v2099_v46 }
  0xc9   :  { %1227 = vmatpush.bf16.msra.mxu0 %v2245_v49  ;;  %1238 = vmatpush.bf16.msra.mxu1 %v2255_v58  ;;  %v2270_v49 = vld [vmem:[%s2594_s11 + $0x24] sm:$0xf0] }
  0xcb   :  { %v541_v28 = vpop.f32.mrf.mxu0 }
  0xcc   :  { %v542_v29 = vadd.f32 %v541_v28, %v154_v27  ;;  %v554_v30 = vpop.f32.mrf.mxu1  ;;  %1055 = vmatmul.bf16.vlgmr.msrb.gmra.mxu1 %v654_v11  ;;  %v2262_v28 = vld [vmem:[%s2590_s7 + $0x18] sm:$0xff] }
  0xcd   :  { %1228 = vmatpush.bf16.msra.mxu0 %v2244_v53  ;;  %1239 = vmatpush.bf16.msra.mxu1 %v2254_v61  ;;  %v2091_v53 = vld [vmem:[%s2594_s11 + $0x18] sm:$0xf0] }
  0xce   :  { %v555_v31 = vadd.f32 %v554_v30, %v542_v29  ;;  %v2261_v29 = vld [vmem:[%s2590_s7 + $0x10] sm:$0xff]  ;;  %v2260_v30 = vld [vmem:[%s2590_s7 + $0x8] sm:$0xff] }
  0xd0   :  { %v586_v33 = vmax.f32 %v555_v31, 0.0  ;;  %v2259_v31 = vld [vmem:[%s2590_s7] sm:$0xff] }
  0xd1   :  { %1229 = vmatpush.bf16.msra.mxu0 %v2243_v57  ;;  %1240 = vmatpush.bf16.msra.mxu1 %v2253_v62  ;;  %v2280_v57 = vld [vmem:[%s2591_s8] ss:$0 sm:$0xff]  ;;  %v2089_v62 = vld [vmem:[%s2594_s11 + $0x10] sm:$0xf] }
  0xd2   :  { %v655_v34 = vpack.c.bf16 %v586_v33, %v586_v33  ;;  %v2263_v33 = vld [vmem:[%s2592_s9] sm:$0xff] }
  0xd3   :  { %v567_v35 = vpop.f32.mrf.mxu2  ;;  %v543_v37 = vpop.f32.mrf.mxu0 }
  0xd4   :  { %v568_v36 = vadd.f32 %v567_v35, %v155_v32  ;;  %v580_v55 = vpop.f32.mrf.mxu3  ;;  %v556_v38 = vpop.f32.mrf.mxu1  ;;  %1016 = vmatmul.bf16.vlgmr.msra.gmra.mxu2 %v655_v34  ;;  %v2264_v32 = vld [vmem:[%s2592_s9 + $0x8] sm:$0xff] }
  0xd5   :  { %1241 = vmatpush.bf16.msra.mxu1 %v2252_v1  ;;  %1294 = vmatpush.bf16.msra.mxu2 %v2262_v28  ;;  %v2265_v1 = vld [vmem:[%s2594_s11 + $0x4] sm:$0xf] }
  0xd6   :  { %v581_v39 = vadd.f32 %v580_v55, %v568_v36  ;;  %v2279_v36 = vld [vmem:[%s2589_s6] ss:$0 sm:$0xff] }
  0xd8   :  { %v587_v56 = vmax.f32 %v581_v39, 0.0 }
  0xd9   :  { %1242 = vmatpush.bf16.msra.mxu1 %v2251_v3  ;;  %1295 = vmatpush.bf16.msra.mxu2 %v2261_v29  ;;  %v2081_v3 = vld [vmem:[%s2594_s11] sm:$0xf] }
  0xda   :  { %v656_v40 = vpack.c.bf16 %v587_v56, %v587_v56 }
  0xdb   :  { %v569_v41 = vpop.f32.mrf.mxu2 }
  0xdc   :  { %v582_v42 = vpop.f32.mrf.mxu3  ;;  %1029 = vmatmul.bf16.vlgmr.msra.gmra.mxu3 %v656_v40  ;;  %v2271_v41 = vld [vmem:[%s2594_s11 + $0x34] sm:$0xf] }
  0xdd   :  { %1296 = vmatpush.bf16.msra.mxu2 %v2260_v30  ;;  %1334 = vmatpush.bf16.msra.mxu3 %v2264_v32  ;;  %v2107_v42 = vld [vmem:[%s2594_s11 + $0x38] sm:$0xf0] }
  0xde   :  { %v2110_v43 = vor.u32 %v2271_v41, %v2107_v42 }
  0xe1   :  { %1297 = vmatpush.bf16.msra.mxu2 %v2259_v31  ;;  %1335 = vmatpush.bf16.msra.mxu3 %v2263_v33 }
  0xe4   :  { %1068 = vmatmul.bf16.vlgmr.msrb.gmra.mxu2 %v655_v34 }
  0xe5   :  { %1404 = vmatpush.bf16.msrb.mxu2 %v2106_v47 }
  0xec   :  { %1081 = vmatmul.bf16.vlgmr.msrb.gmra.mxu3 %v656_v40 }
  0xed   :  { %1417 = vmatpush.bf16.msrb.mxu3 %v2110_v43 }
  0xf1   :  { %1418 = vmatpush.bf16.msrb.mxu3 %v2102_v50 }
 0x131   :  { %v991_v48 = vpop.f32.mrf.mxu0 }
 0x132   :  { %v992_v6 = vadd.f32 %v991_v48, %v658_v4  ;;  %v2097_v48 = vld [vmem:[%s2594_s11 + $0x20] sm:$0xf]  ;;  %v2086_v4 = vor.u32 %v2265_v1, %v2083_v2 }
 0x139   :  { %v1004_v51 = vpop.f32.mrf.mxu1  ;;  %v993_v52 = vpop.f32.mrf.mxu0 }
 0x13a   :  { %v1005_v8 = vadd.f32 %v1004_v51, %v992_v6  ;;  %v2098_v51 = vor.u32 %v2270_v49, %v2097_v48  ;;  %v2267_v52 = vld [vmem:[%s2594_s11 + $0x14] sm:$0xf] }
 0x13b   :  { %v2094_v54 = vor.u32 %v2267_v52, %v2091_v53 }
 0x13c   :  { %1405 = vmatpush.bf16.msrb.mxu2 %v2098_v51 }
 0x13d   :  { %1419 = vmatpush.bf16.msrb.mxu3 %v2094_v54 }
 0x141   :  { %v1006_v59 = vpop.f32.mrf.mxu1  ;;  %v1043_v60 = vpop.f32.mrf.mxu0  ;;  %1420 = vmatpush.bf16.msrb.mxu3 %v2086_v4 }
 0x142   :  { %v1044_v18 = vadd.f32 %v1043_v60, %v659_v15 }
 0x149   :  { %v1056_v63 = vpop.f32.mrf.mxu1  ;;  %v1045_v0 = vpop.f32.mrf.mxu0 }
 0x14a   :  { %v1057_v19 = vadd.f32 %v1056_v63, %v1044_v18  ;;  %v2268_v63 = vld [vmem:[%s2594_s11 + $0x14] sm:$0xf0] }
 0x14b   :  { %v2090_v0 = vor.u32 %v2268_v63, %v2089_v62 }
 0x14d   :  { %1406 = vmatpush.bf16.msrb.mxu2 %v2090_v0 }
 0x151   :  { %v1058_v5 = vpop.f32.mrf.mxu1 }
 0x152   :  { %v2266_v5 = vld [vmem:[%s2594_s11 + $0x4] sm:$0xf0] }
 0x153   :  { %v2082_v6 = vor.u32 %v2266_v5, %v2081_v3 }
 0x155   :  { %1407 = vmatpush.bf16.msrb.mxu2 %v2082_v6 }
 0x157   :  { %v1017_v7 = vpop.f32.mrf.mxu2 }
 0x158   :  { %v1018_v9 = vadd.f32 %v1017_v7, %v1005_v8  ;;  %v2281_v7 = vld [vmem:[%s2593_s10] ss:$0 sm:$0xff] }
 0x15f   :  { %v1030_v10 = vpop.f32.mrf.mxu3  ;;  %v1019_v12 = vpop.f32.mrf.mxu2 }
 0x160   :  { %v1031_v11 = vadd.f32 %v1030_v10, %v1018_v9 }
 0x162   :  { %v1086_v13 = vmax.f32 %v1031_v11, 0.0 }
 0x164   :  { %v1121_v14 = vpack.c.bf16 %v1086_v13, %v1086_v13  ;;  %v1350_v13 = vld [vmem:[%s2595_s12] sm:$0x3] }
 0x165   :  { %v1354_v15 = vperm.slane %v1350_v13, 1 }
 0x166   :  { %1230 = vmatmul.bf16.vlgmr.msra.gmra.mxu0 %v1121_v14  ;;  %v1353_v14 = vperm.slane %v1350_v13, 0 }
 0x167   :  { %v1032_v16 = vpop.f32.mrf.mxu3  ;;  %v1069_v17 = vpop.f32.mrf.mxu2 }
 0x168   :  { %v1070_v21 = vadd.f32 %v1069_v17, %v1057_v19 }
 0x16f   :  { %v1082_v22 = vpop.f32.mrf.mxu3  ;;  %v1071_v24 = vpop.f32.mrf.mxu2 }
 0x170   :  { %v1083_v23 = vadd.f32 %v1082_v22, %v1070_v21 }
 0x172   :  { %v1087_v25 = vmax.f32 %v1083_v23, 0.0 }
 0x174   :  { %v1122_v26 = vpack.c.bf16 %v1087_v25, %v1087_v25 }
 0x176   :  { %1243 = vmatmul.bf16.vlgmr.msra.gmra.mxu1 %v1122_v26 }
 0x177   :  { %v1084_v27 = vpop.f32.mrf.mxu3 }
 0x1e3   :  { %v1231_v34 = vpop.f32.mrf.mxu0 }
 0x1e4   :  { %v1232_v55 = vadd.f32 %v2279_v36, %v1231_v34 }
 0x1eb   :  { %v1233_v35 = vpop.f32.mrf.mxu0 }
 0x1f3   :  { %v1244_v37 = vpop.f32.mrf.mxu1 }
 0x1f4   :  { %v1245_v38 = vadd.f32 %v1244_v37, %v1232_v55 }
 0x1f6   :  { %v1248_v39 = vmax.f32 %v1245_v38, 0.0 }
 0x1f8   :  { %v1258_v56 = vpack.c.bf16 %v1248_v39, %v1248_v39 }
 0x1fa   :  { %2069 = vmatmul.msk.bf16.vlgmr.msra.gmra.mxu2 %vm1286_vm0, %v1258_v56 }
 0x1fb   :  { %v1246_v40 = vpop.f32.mrf.mxu1 }
 0x27d   :  { %v1299_v58 = vpop.f32.mrf.mxu2 }
 0x27e   :  { %v1300_v59 = vadd.f32 %v2280_v57, %v1299_v58 }
 0x280   :  { %v1308_v60 = vpack.c.bf16 %v1300_v59, %v1300_v59 }
 0x282   :  { %2078 = vmatmul.msk.bf16.vlgmr.msra.gmra.mxu3 %vm1324_vm1, %v1308_v60 }
 0x285   :  { %v1301_v61 = vpop.f32.mrf.mxu2 }
 0x305   :  { %v1337_v8 = vpop.f32.mrf.mxu3 }
 0x306   :  { %v1338_v9 = vadd.f32 %v2281_v7, %v1337_v8 }
 0x308   :  { %v1341_v10 = vmax.f32 %v1338_v9, 0.0 }
 0x30a   :  { %v1351_v11 = vpack.c.bf16 %v1341_v10, %v1341_v10 }
 0x30c   :  { %2111 = vmatmul.msk.bf16.vlgmr.msrb.gmra.mxu2 %vm1286_vm0, %v1351_v11  ;;  %2112 = vmatmul.msk.bf16.vlgmr.msrb.gmra.mxu3 %vm1286_vm0, %v1351_v11 }
 0x30d   :  { %v1339_v12 = vpop.f32.mrf.mxu3 }
 0x38f   :  { %v1409_v16 = vpop.f32.mrf.mxu2  ;;  %v1422_v17 = vpop.f32.mrf.mxu3 }
 0x390   :  { %v1410_v18 = vadd.f32 %v1409_v16, %v1353_v14  ;;  %v1423_v19 = vadd.f32 %v1422_v17, %v1354_v15 }
 0x392   :  { %v2113_v21 = vmul.f32 -1.442695, %v1410_v18  ;;  %v2114_v22 = vmul.f32 -1.442695, %v1423_v19 }
 0x394   :  { %2282 = vpow2.f32 %v2113_v21 }
 0x395   :  { %2284 = vpow2.f32 %v2114_v22 }
 0x397   :  { %v1411_v23 = vpop.f32.mrf.mxu2  ;;  %v1424_v24 = vpop.f32.mrf.mxu3 }
 0x39a   :  { %v2283_v25 = vpop.eup %2282 }
 0x39b   :  { %v2285_v26 = vpop.eup %2284  ;;  %v1432_v27 = vadd.f32 1.0, %v2283_v25 }
 0x39c   :  { %v1433_v28 = vadd.f32 1.0, %v2285_v26 }
 0x39d   :  { %2286 = vrcp.f32 %v1432_v27  ;;  %vm1439_vm4 = vweird.f32 %v1432_v27  ;;  %v1445_v39 = vand.u32 2147483648, %v1432_v27  ;;  %v1443_v56 = vand.u32 2147483647, %v1432_v27 }
 0x39e   :  { %2288 = vrcp.f32 %v1433_v28  ;;  %v1460_v36 = vand.u32 2147483648, %v1433_v28  ;;  %v1458_v37 = vand.u32 2147483647, %v1433_v28  ;;  %vm1454_vm6 = vweird.f32 %v1433_v28 }
 0x39f   :  { %v1446_v43 = vor.u32 1.1754944e-38, %v1445_v39  ;;  %vm1444_vm10 = vcmp.eq.f32.partialorder %v1443_v56, 8.507059e+37 }
 0x3a0   :  { %v1461_v41 = vor.u32 1.1754944e-38, %v1460_v36  ;;  %vm1459_vm8 = vcmp.eq.f32.partialorder %v1458_v37, 8.507059e+37 }
 0x3a3   :  { %v2287_v29 = vpop.eup %2286 }
 0x3a4   :  { %v2289_v30 = vpop.eup %2288  ;;  %v1435_v31 = vmul.f32 %v2287_v29, %v1432_v27  ;;  %vm1440_vm2 = vweird.f32 %v2287_v29 }
 0x3a5   :  { %v1450_v32 = vmul.f32 %v2289_v30, %v1433_v28  ;;  %vm1455_vm3 = vweird.f32 %v2289_v30  ;;  %vm1441_vm5 = vmor %vm1439_vm4, %vm1440_vm2 }
 0x3a6   :  { %v1436_v33 = vsub.f32 1.0, %v1435_v31  ;;  %vm1456_vm7 = vmor %vm1454_vm6, %vm1455_vm3 }
 0x3a7   :  { %v1451_v34 = vsub.f32 1.0, %v1450_v32 }
 0x3a8   :  { %v1437_v35 = vmul.f32 %v2287_v29, %v1436_v33 }
 0x3a9   :  { %v1452_v55 = vmul.f32 %v2289_v30, %v1451_v34 }
 0x3aa   :  { %v1438_v38 = vadd.f32 %v2287_v29, %v1437_v35 }
 0x3ab   :  { %v1453_v40 = vadd.f32 %v2289_v30, %v1452_v55 }
 0x3ac   :  { %v1442_v42 = vsel %vm1441_vm5, %v2287_v29, %v1438_v38 }
 0x3ad   :  { %v1457_v20 = vsel %vm1456_vm7, %v2289_v30, %v1453_v40  ;;  %v1447_v46 = vsel %vm1444_vm10, %v1446_v43, %v1442_v42 }
 0x3ae   :  { %v1462_v44 = vsel %vm1459_vm8, %v1461_v41, %v1457_v20 }
 0x3af   :  { %v1466_v45 = vrot.slane %v1462_v44, 6 }
 0x3b1   :  { %v1468_v47 = vsel %vm1467_vm9, %v1447_v46, %v1466_v45 }
 0x3b2   :  { %1470 = vst [vmem:[%s2596_s13] sm:$0xf] %v1468_v47 }
 0x3b3   :  { %1475 = vsyncpa [#allocation3], 1 }
 0x3b4   :  { %1476 = vsyncpa [#allocation5], 1 }

</bundles_post_ra>
